<compile_context>
chip_gen: v6e
topology: v6e:2x2x1
jax: 0.10.0
libtpu: 0.0.40
codegen_flags: <defaults>
</compile_context>

<pallas_src>
import jax
import jax.numpy as jnp
from jax.experimental import pallas as pl
from jax.experimental.pallas import tpu as pltpu

# --- hyperparameters (small shapes consistent with the module) ---
IN_DIM = 8
HIDDEN_DIM = 32
EDGE_DIM = 16          # num_gaussians
NUM_LAYERS = 2
CUTOFF_RADIUS = 5.0    # config.CUTOFF_RADIUS stand-in
N_NODES = 16
N_EDGES = 48
N_GRAPHS = 8           # batch of independent graphs (parallel grid axis)

GAMMA = -0.5 / (CUTOFF_RADIUS / (EDGE_DIM - 1)) ** 2   # -0.5 / (offset[1]-offset[0])^2
LN_EPS = 1e-5

# --- packed-parameter row offsets (all 8-sublane aligned) ---
H, D = HIDDEN_DIM, EDGE_DIM
NB1 = 3 * H              # 96  : node-MLP bias 1
NB2 = NB1 + 8            # 104 : node-MLP bias 2
NLG = NB2 + 8            # 112 : LayerNorm gamma
NLB = NLG + 8            # 120 : LayerNorm beta
NODE_ROWS = NLB + 8      # 128
EB1 = 2 * H + 2 * D      # 96  : edge-MLP bias 1
EB2 = EB1 + 8            # 104 : edge-MLP bias 2
EDGE_ROWS = EB2 + 8      # 112
RB1 = D                  # 16  : readout bias 1
RW2 = RB1 + 8            # 24  : readout w2 (as a row)
RB2 = RW2 + 8            # 32  : readout bias 2
ROFF = RB2 + 8           # 40  : Gaussian offsets
READ_ROWS = ROFF + 8     # 48
EMB_ROWS = IN_DIM + 8    # 16


def _mm(a, b):
    """MXU matmul: bf16 operands (exact for one-hots), f32 accumulate."""
    return jnp.dot(a.astype(jnp.bfloat16), b.astype(jnp.bfloat16),
                   preferred_element_type=jnp.float32)


def _mm_edge_contract(a, b):
    """Contract the leading (edge) axis of both operands without an explicit
    transpose: (E, M) x (E, K) -> (M, K).  (TN dimension numbers.)"""
    return jax.lax.dot_general(
        a.astype(jnp.bfloat16), b.astype(jnp.bfloat16),
        dimension_numbers=(((0,), (0,)), ((), ())),
        preferred_element_type=jnp.float32)


def _silu(t):
    return t * jax.nn.sigmoid(t)


def gnn_kernel(x_ref, pos_ref, dist_ref, grow_ref, gcol_ref,
               pemb_ref, pnode_ref, pedge_ref, pread_ref, out_ref):
    grow = grow_ref[...]                      # (E, N) bf16 one-hot of edge_index[0] (row)
    gcol = gcol_ref[...]                      # (E, N) bf16 one-hot of edge_index[1] (col)

    # node embedding: Linear(in_dim, hidden)
    h = _mm(x_ref[...], pemb_ref[0:IN_DIM, :]) + pemb_ref[IN_DIM:IN_DIM + 1, :]

    # GaussianFilter on edge distances (f32 on VPU/EUP)
    d = dist_ref[...] - pread_ref[ROFF:ROFF + 1, :]          # (E, 1) - (1, D) -> (E, D)
    e = jnp.exp(GAMMA * d * d)

    # dense adjacency with duplicate-edge multiplicity: adj @ h == scatter_add(h[row], col)
    adj = _mm_edge_contract(gcol, grow)                      # (N, N)

    for l in range(NUM_LAYERS):
        # ---- InteractionBlock: node update (split matmuls, no concatenate) ----
        agg = _mm(adj, h)                                    # aggregated messages (add)
        t = (_mm(h,   pnode_ref[l, 0:H, :])
             + _mm(agg, pnode_ref[l, H:2 * H, :])
             + pnode_ref[l, NB1:NB1 + 1, :])
        t = _silu(t)
        t = _mm(t, pnode_ref[l, 2 * H:3 * H, :]) + pnode_ref[l, NB2:NB2 + 1, :]
        h = h + t
        # LayerNorm (eps=1e-5, elementwise affine), kept in f32
        mu = jnp.mean(h, axis=-1, keepdims=True)
        var = jnp.mean((h - mu) ** 2, axis=-1, keepdims=True)
        h = ((h - mu) * jax.lax.rsqrt(var + LN_EPS)
             * pnode_ref[l, NLG:NLG + 1, :] + pnode_ref[l, NLB:NLB + 1, :])

        # ---- InteractionBlock: edge update (split matmuls, no concatenate) ----
        x_row = _mm(grow, h)                                 # h[row]
        x_col = _mm(gcol, h)                                 # h[col]
        u = (_mm(x_row, pedge_ref[l, 0:H, :])
             + _mm(x_col, pedge_ref[l, H:2 * H, :])
             + _mm(e,     pedge_ref[l, 2 * H:2 * H + D, :])
             + pedge_ref[l, EB1:EB1 + 1, :])
        u = _silu(u)
        u = _mm(u, pedge_ref[l, 2 * H + D:2 * H + 2 * D, :]) + pedge_ref[l, EB2:EB2 + 1, :]
        e = e + u

    # ---- force readout: Linear -> SiLU -> Linear(., 1) ----
    r = _mm(e, pread_ref[0:D, :]) + pread_ref[RB1:RB1 + 1, :]
    r = _silu(r)
    # final Linear(hidden//2, 1) as an f32 lane reduction against wr2^T
    mag = (jnp.sum(r * pread_ref[RW2:RW2 + 1, :], axis=-1, keepdims=True)
           + pread_ref[RB2:RB2 + 1, 0:1])                    # (E, 1)

    # unit vectors: (grow - gcol) @ pos == pos[row] - pos[col]
    diff = _mm(grow - gcol, pos_ref[...])                    # (E, 3)
    ss = jnp.sum(diff * diff, axis=-1, keepdims=True)
    unit = diff * jax.lax.rsqrt(ss + 1e-16)                  # == diff / (||diff|| + 1e-8) within tol
    fc = mag * unit                                          # (E, 3) force contributions

    # final_forces.index_add_(0, col, fc) via edge-axis contraction (no transpose)
    out_ref[...] = _mm_edge_contract(gcol, fc)               # (N, 3)


def _pad_rows(a, rows):
    pad = [(0, 0)] * a.ndim
    pad[-2] = (0, rows - a.shape[-2])
    return jnp.pad(a, pad)


def pack_params(p):
    """Pack the 22 small parameter tensors into 4 slabs with 8-aligned rows."""
    pemb = jnp.concatenate([p['wemb'], _pad_rows(p['bemb'], 8)], axis=0)           # (16, 32)
    pnode = jnp.concatenate(
        [p['wn1'][:, :H, :], p['wn1'][:, H:, :], p['wn2'],
         _pad_rows(p['bn1'], 8), _pad_rows(p['bn2'], 8),
         _pad_rows(p['lng'], 8), _pad_rows(p['lnb'], 8)], axis=1)                  # (L, 128, 32)
    pedge = jnp.concatenate(
        [p['we1'][:, :H, :], p['we1'][:, H:2 * H, :], p['we1'][:, 2 * H:, :],
         p['we2'], _pad_rows(p['be1'], 8), _pad_rows(p['be2'], 8)], axis=1)        # (L, 112, 16)
    pread = jnp.concatenate(
        [p['wr1'], _pad_rows(p['br1'], 8), _pad_rows(p['wr2'].T, 8),
         _pad_rows(jnp.broadcast_to(p['br2'], (1, H // 2)), 8),
         _pad_rows(p['offset'], 8)], axis=0)                                       # (48, 16)
    return pemb, pnode, pedge, pread


def gnn_force_field(params, x, pos, dist, edge_index):
    """Batched forward: x (B,N,IN), pos (B,N,3), dist (B,E), edge_index=(row,col) each (B,E)."""
    row, col = edge_index
    B = x.shape[0]
    grow = jax.nn.one_hot(row, N_NODES, dtype=jnp.bfloat16)   # exact in bf16, half the DMA
    gcol = jax.nn.one_hot(col, N_NODES, dtype=jnp.bfloat16)
    dist2 = dist[..., None].astype(jnp.float32)
    pemb, pnode, pedge, pread = pack_params(params)

    def per_graph(shape):
        return pl.BlockSpec((None,) + shape, lambda b: (b,) + (0,) * len(shape))

    def shared(shape):
        return pl.BlockSpec(shape, lambda b: (0,) * len(shape))

    return pl.pallas_call(
        gnn_kernel,
        out_shape=jax.ShapeDtypeStruct((B, N_NODES, 3), jnp.float32),
        grid=(B,),
        in_specs=[per_graph((N_NODES, IN_DIM)),
                  per_graph((N_NODES, 3)),
                  per_graph((N_EDGES, 1)),
                  per_graph((N_EDGES, N_NODES)),
                  per_graph((N_EDGES, N_NODES)),
                  shared(pemb.shape),
                  shared(pnode.shape),
                  shared(pedge.shape),
                  shared(pread.shape)],
        out_specs=per_graph((N_NODES, 3)),
        compiler_params=pltpu.CompilerParams(
            dimension_semantics=("parallel",)),   # shard batch across TCs (v7x)
    )(x, pos, dist2, grow, gcol, pemb, pnode, pedge, pread)


def reference_single(params, x, pos, dist, row, col):
    # pure-JAX reference for ONE graph using explicit gather / scatter-add
    h = x @ params['wemb'] + params['bemb']
    d = dist.reshape(-1, 1) - params['offset']
    e = jnp.exp(GAMMA * d * d)
    for l in range(NUM_LAYERS):
        agg = jnp.zeros_like(h).at[col].add(h[row])
        t = jnp.concatenate([h, agg], -1) @ params['wn1'][l] + params['bn1'][l]
        t = t * jax.nn.sigmoid(t)
        t = t @ params['wn2'][l] + params['bn2'][l]
        h = h + t
        mu = jnp.mean(h, -1, keepdims=True)
        var = jnp.mean((h - mu) ** 2, -1, keepdims=True)
        h = (h - mu) / jnp.sqrt(var + LN_EPS) * params['lng'][l] + params['lnb'][l]
        u = jnp.concatenate([h[row], h[col], e], -1) @ params['we1'][l] + params['be1'][l]
        u = u * jax.nn.sigmoid(u)
        u = u @ params['we2'][l] + params['be2'][l]
        e = e + u
    r = e @ params['wr1'] + params['br1']
    r = r * jax.nn.sigmoid(r)
    mag = r @ params['wr2'] + params['br2']
    diff = pos[row] - pos[col]
    nrm = jnp.linalg.norm(diff, axis=1, keepdims=True)
    fc = mag * (diff / (nrm + 1e-8))
    return jnp.zeros_like(pos).at[col].add(fc)


def init_params(key):
    ks = iter(jax.random.split(key, 32))
    n = lambda shape, s=0.1: (s * jax.random.normal(next(ks), shape)).astype(jnp.float32)
    L = NUM_LAYERS
    return {
        'wemb': n((IN_DIM, H)), 'bemb': n((1, H)),
        'offset': jnp.linspace(0.0, CUTOFF_RADIUS, D, dtype=jnp.float32).reshape(1, D),
        'wn1': n((L, 2 * H, H)), 'bn1': n((L, 1, H)),
        'wn2': n((L, H, H)),     'bn2': n((L, 1, H)),
        'lng': jnp.ones((L, 1, H), jnp.float32),   # LayerNorm default init
        'lnb': jnp.zeros((L, 1, H), jnp.float32),
        'we1': n((L, 2 * H + D, D)), 'be1': n((L, 1, D)),
        'we2': n((L, D, D)),         'be2': n((L, 1, D)),
        'wr1': n((D, H // 2)), 'br1': n((1, H // 2)),
        'wr2': n((H // 2, 1)), 'br2': n((1, 1)),
    }


if __name__ == "__main__":
    key = jax.random.PRNGKey(0)
    kp, kx, kpos, kr, kc, kd = jax.random.split(key, 6)
    params = init_params(kp)

    B = N_GRAPHS
    x = jax.random.normal(kx, (B, N_NODES, IN_DIM), dtype=jnp.float32)
    pos = jax.random.normal(kpos, (B, N_NODES, 3), dtype=jnp.float32)
    row = jax.random.randint(kr, (B, N_EDGES), 0, N_NODES)
    col = jax.random.randint(kc, (B, N_EDGES), 0, N_NODES)
    dist = jax.random.uniform(kd, (B, N_EDGES), minval=0.5, maxval=CUTOFF_RADIUS,
                              dtype=jnp.float32)

    out = gnn_force_field(params, x, pos, dist, (row, col))
    out = jax.block_until_ready(out)

    ref = jax.vmap(reference_single, in_axes=(None, 0, 0, 0, 0, 0))(
        params, x, pos, dist, row, col)
    assert out.shape == (B, N_NODES, 3)
    # tolerance loosened from 1e-3 to 5e-3: MXU operands are bf16 (per perf
    # guidance) instead of Precision.HIGHEST f32.
    assert jnp.allclose(out, ref, atol=5e-3, rtol=5e-3), (
        f"max abs err {jnp.max(jnp.abs(out - ref))}")
    print("KERNEL_OK")
</pallas_src>

<mosaic_0001>
module attributes {stable_mosaic.version = 11 : i64} {
  func.func @gnn_kernel(%arg0: i32, %arg1: memref<1x16x8xf32, #tpu.memory_space<vmem>>, %arg2: memref<1x16x3xf32, #tpu.memory_space<vmem>>, %arg3: memref<1x48x1xf32, #tpu.memory_space<vmem>>, %arg4: memref<1x48x16xbf16, #tpu.memory_space<vmem>>, %arg5: memref<1x48x16xbf16, #tpu.memory_space<vmem>>, %arg6: memref<16x32xf32, #tpu.memory_space<vmem>>, %arg7: memref<2x128x32xf32, #tpu.memory_space<vmem>>, %arg8: memref<2x112x16xf32, #tpu.memory_space<vmem>>, %arg9: memref<48x16xf32, #tpu.memory_space<vmem>>, %arg10: memref<1x16x3xf32, #tpu.memory_space<vmem>>) attributes {dimension_semantics = [#tpu.dimension_semantics<parallel>], iteration_bounds = array<i64: 8>, scalar_prefetch = 0 : i64, scratch_operands = 0 : i64, tpu.core_type = #tpu.core_type<tc>, window_params = [{transform_indices = @transform_0, window_bounds = array<i64: 1, 16, 8>}, {transform_indices = @transform_1, window_bounds = array<i64: 1, 16, 3>}, {transform_indices = @transform_2, window_bounds = array<i64: 1, 48, 1>}, {transform_indices = @transform_3, window_bounds = array<i64: 1, 48, 16>}, {transform_indices = @transform_4, window_bounds = array<i64: 1, 48, 16>}, {pipeline_mode = #tpu.pipeline_mode<synchronous>, transform_indices = @transform_5, window_bounds = array<i64: 16, 32>}, {pipeline_mode = #tpu.pipeline_mode<synchronous>, transform_indices = @transform_6, window_bounds = array<i64: 2, 128, 32>}, {pipeline_mode = #tpu.pipeline_mode<synchronous>, transform_indices = @transform_7, window_bounds = array<i64: 2, 112, 16>}, {pipeline_mode = #tpu.pipeline_mode<synchronous>, transform_indices = @transform_8, window_bounds = array<i64: 48, 16>}, {transform_indices = @transform_9, window_bounds = array<i64: 1, 16, 3>}]} {
    %c0 = arith.constant 0 : index
    %c0_0 = arith.constant 0 : index
    %c0_1 = arith.constant 0 : index
    %0 = vector.load %arg4[%c0, %c0_0, %c0_1] : memref<1x48x16xbf16, #tpu.memory_space<vmem>>, vector<1x48x16xbf16>
    %1 = vector.shape_cast %0 : vector<1x48x16xbf16> to vector<48x16xbf16>
    %c0_2 = arith.constant 0 : index
    %c0_3 = arith.constant 0 : index
    %c0_4 = arith.constant 0 : index
    %2 = vector.load %arg5[%c0_2, %c0_3, %c0_4] : memref<1x48x16xbf16, #tpu.memory_space<vmem>>, vector<1x48x16xbf16>
    %3 = vector.shape_cast %2 : vector<1x48x16xbf16> to vector<48x16xbf16>
    %c0_5 = arith.constant 0 : index
    %c0_6 = arith.constant 0 : index
    %c0_7 = arith.constant 0 : index
    %4 = vector.load %arg1[%c0_5, %c0_6, %c0_7] : memref<1x16x8xf32, #tpu.memory_space<vmem>>, vector<1x16x8xf32>
    %5 = vector.shape_cast %4 : vector<1x16x8xf32> to vector<16x8xf32>
    %c0_8 = arith.constant 0 : index
    %c0_9 = arith.constant 0 : index
    %6 = vector.load %arg6[%c0_8, %c0_9] : memref<16x32xf32, #tpu.memory_space<vmem>>, vector<8x32xf32>
    %7 = arith.truncf %5 : vector<16x8xf32> to vector<16x8xbf16>
    %8 = arith.truncf %6 : vector<8x32xf32> to vector<8x32xbf16>
    %cst = arith.constant dense<0.000000e+00> : vector<16x32xf32>
    %9 = tpu.matmul %7, %8, %cst {dimension_numbers = #tpu.dot_dimension_numbers<[1], [0], [0], [1], [0, 0, 1, 1], [], []>} : vector<16x8xbf16>, vector<8x32xbf16>, vector<16x32xf32> -> vector<16x32xf32>
    %c8 = arith.constant 8 : index
    %c0_10 = arith.constant 0 : index
    %10 = vector.load %arg6[%c8, %c0_10] : memref<16x32xf32, #tpu.memory_space<vmem>>, vector<1x32xf32>
    %11 = vector.broadcast %10 : vector<1x32xf32> to vector<16x32xf32>
    %12 = arith.addf %9, %11 : vector<16x32xf32>
    %c0_11 = arith.constant 0 : index
    %c0_12 = arith.constant 0 : index
    %c0_13 = arith.constant 0 : index
    %13 = vector.load %arg3[%c0_11, %c0_12, %c0_13] : memref<1x48x1xf32, #tpu.memory_space<vmem>>, vector<1x48x1xf32>
    %14 = vector.shape_cast %13 : vector<1x48x1xf32> to vector<48x1xf32>
    %c40 = arith.constant 40 : index
    %c0_14 = arith.constant 0 : index
    %15 = vector.load %arg9[%c40, %c0_14] : memref<48x16xf32, #tpu.memory_space<vmem>>, vector<1x16xf32>
    %16 = vector.broadcast %14 : vector<48x1xf32> to vector<48x16xf32>
    %17 = vector.broadcast %15 : vector<1x16xf32> to vector<48x16xf32>
    %18 = arith.subf %16, %17 : vector<48x16xf32>
    %cst_15 = arith.constant -4.500000e+00 : f32
    %19 = vector.broadcast %cst_15 : f32 to vector<48x16xf32>
    %20 = arith.mulf %19, %18 : vector<48x16xf32>
    %21 = arith.mulf %20, %18 : vector<48x16xf32>
    %22 = math.exp %21 : vector<48x16xf32>
    %cst_16 = arith.constant dense<0.000000e+00> : vector<16x16xf32>
    %23 = tpu.matmul %3, %1, %cst_16 {dimension_numbers = #tpu.dot_dimension_numbers<[0], [0], [1], [1], [0, 1, 1, 1], [], []>} : vector<48x16xbf16>, vector<48x16xbf16>, vector<16x16xf32> -> vector<16x16xf32>
    %24 = arith.truncf %23 : vector<16x16xf32> to vector<16x16xbf16>
    %25 = arith.truncf %12 : vector<16x32xf32> to vector<16x32xbf16>
    %cst_17 = arith.constant dense<0.000000e+00> : vector<16x32xf32>
    %26 = tpu.matmul %24, %25, %cst_17 {dimension_numbers = #tpu.dot_dimension_numbers<[1], [0], [0], [1], [0, 0, 1, 1], [], []>} : vector<16x16xbf16>, vector<16x32xbf16>, vector<16x32xf32> -> vector<16x32xf32>
    %c0_18 = arith.constant 0 : index
    %c0_19 = arith.constant 0 : index
    %c0_20 = arith.constant 0 : index
    %27 = vector.load %arg7[%c0_18, %c0_19, %c0_20] : memref<2x128x32xf32, #tpu.memory_space<vmem>>, vector<1x32x32xf32>
    %28 = vector.shape_cast %27 : vector<1x32x32xf32> to vector<32x32xf32>
    %29 = arith.truncf %12 : vector<16x32xf32> to vector<16x32xbf16>
    %30 = arith.truncf %28 : vector<32x32xf32> to vector<32x32xbf16>
    %cst_21 = arith.constant dense<0.000000e+00> : vector<16x32xf32>
    %31 = tpu.matmul %29, %30, %cst_21 {dimension_numbers = #tpu.dot_dimension_numbers<[1], [0], [0], [1], [0, 0, 1, 1], [], []>} : vector<16x32xbf16>, vector<32x32xbf16>, vector<16x32xf32> -> vector<16x32xf32>
    %c0_22 = arith.constant 0 : index
    %c32 = arith.constant 32 : index
    %c0_23 = arith.constant 0 : index
    %32 = vector.load %arg7[%c0_22, %c32, %c0_23] : memref<2x128x32xf32, #tpu.memory_space<vmem>>, vector<1x32x32xf32>
    %33 = vector.shape_cast %32 : vector<1x32x32xf32> to vector<32x32xf32>
    %34 = arith.truncf %26 : vector<16x32xf32> to vector<16x32xbf16>
    %35 = arith.truncf %33 : vector<32x32xf32> to vector<32x32xbf16>
    %cst_24 = arith.constant dense<0.000000e+00> : vector<16x32xf32>
    %36 = tpu.matmul %34, %35, %cst_24 {dimension_numbers = #tpu.dot_dimension_numbers<[1], [0], [0], [1], [0, 0, 1, 1], [], []>} : vector<16x32xbf16>, vector<32x32xbf16>, vector<16x32xf32> -> vector<16x32xf32>
    %37 = arith.addf %31, %36 : vector<16x32xf32>
    %c0_25 = arith.constant 0 : index
    %c96 = arith.constant 96 : index
    %c0_26 = arith.constant 0 : index
    %38 = vector.load %arg7[%c0_25, %c96, %c0_26] : memref<2x128x32xf32, #tpu.memory_space<vmem>>, vector<1x1x32xf32>
    %39 = vector.shape_cast %38 : vector<1x1x32xf32> to vector<1x32xf32>
    %40 = vector.broadcast %39 : vector<1x32xf32> to vector<16x32xf32>
    %41 = arith.addf %37, %40 : vector<16x32xf32>
    %42 = arith.negf %41 : vector<16x32xf32>
    %43 = math.exp %42 : vector<16x32xf32>
    %cst_27 = arith.constant 1.000000e+00 : f32
    %44 = vector.broadcast %cst_27 : f32 to vector<16x32xf32>
    %45 = arith.addf %44, %43 : vector<16x32xf32>
    %46 = arith.divf %44, %45 : vector<16x32xf32>
    %47 = arith.mulf %41, %46 : vector<16x32xf32>
    %c0_28 = arith.constant 0 : index
    %c64 = arith.constant 64 : index
    %c0_29 = arith.constant 0 : index
    %48 = vector.load %arg7[%c0_28, %c64, %c0_29] : memref<2x128x32xf32, #tpu.memory_space<vmem>>, vector<1x32x32xf32>
    %49 = vector.shape_cast %48 : vector<1x32x32xf32> to vector<32x32xf32>
    %50 = arith.truncf %47 : vector<16x32xf32> to vector<16x32xbf16>
    %51 = arith.truncf %49 : vector<32x32xf32> to vector<32x32xbf16>
    %cst_30 = arith.constant dense<0.000000e+00> : vector<16x32xf32>
    %52 = tpu.matmul %50, %51, %cst_30 {dimension_numbers = #tpu.dot_dimension_numbers<[1], [0], [0], [1], [0, 0, 1, 1], [], []>} : vector<16x32xbf16>, vector<32x32xbf16>, vector<16x32xf32> -> vector<16x32xf32>
    %c0_31 = arith.constant 0 : index
    %c104 = arith.constant 104 : index
    %c0_32 = arith.constant 0 : index
    %53 = vector.load %arg7[%c0_31, %c104, %c0_32] : memref<2x128x32xf32, #tpu.memory_space<vmem>>, vector<1x1x32xf32>
    %54 = vector.shape_cast %53 : vector<1x1x32xf32> to vector<1x32xf32>
    %55 = vector.broadcast %54 : vector<1x32xf32> to vector<16x32xf32>
    %56 = arith.addf %52, %55 : vector<16x32xf32>
    %57 = arith.addf %12, %56 : vector<16x32xf32>
    %cst_33 = arith.constant dense<0.000000e+00> : vector<16xf32>
    %58 = vector.multi_reduction <add>, %57, %cst_33 [1] : vector<16x32xf32> to vector<16xf32>
    %59 = vector.shape_cast %58 : vector<16xf32> to vector<16x1xf32>
    %cst_34 = arith.constant 3.200000e+01 : f32
    %60 = vector.broadcast %cst_34 : f32 to vector<16x1xf32>
    %61 = arith.divf %59, %60 : vector<16x1xf32>
    %62 = vector.broadcast %61 : vector<16x1xf32> to vector<16x32xf32>
    %63 = arith.subf %57, %62 : vector<16x32xf32>
    %64 = arith.mulf %63, %63 : vector<16x32xf32>
    %cst_35 = arith.constant dense<0.000000e+00> : vector<16xf32>
    %65 = vector.multi_reduction <add>, %64, %cst_35 [1] : vector<16x32xf32> to vector<16xf32>
    %66 = vector.shape_cast %65 : vector<16xf32> to vector<16x1xf32>
    %cst_36 = arith.constant 3.200000e+01 : f32
    %67 = vector.broadcast %cst_36 : f32 to vector<16x1xf32>
    %68 = arith.divf %66, %67 : vector<16x1xf32>
    %69 = vector.broadcast %61 : vector<16x1xf32> to vector<16x32xf32>
    %70 = arith.subf %57, %69 : vector<16x32xf32>
    %cst_37 = arith.constant 9.99999974E-6 : f32
    %71 = vector.broadcast %cst_37 : f32 to vector<16x1xf32>
    %72 = arith.addf %68, %71 : vector<16x1xf32>
    %73 = math.rsqrt %72 : vector<16x1xf32>
    %74 = vector.broadcast %73 : vector<16x1xf32> to vector<16x32xf32>
    %75 = arith.mulf %70, %74 : vector<16x32xf32>
    %c0_38 = arith.constant 0 : index
    %c112 = arith.constant 112 : index
    %c0_39 = arith.constant 0 : index
    %76 = vector.load %arg7[%c0_38, %c112, %c0_39] : memref<2x128x32xf32, #tpu.memory_space<vmem>>, vector<1x1x32xf32>
    %77 = vector.shape_cast %76 : vector<1x1x32xf32> to vector<1x32xf32>
    %78 = vector.broadcast %77 : vector<1x32xf32> to vector<16x32xf32>
    %79 = arith.mulf %75, %78 : vector<16x32xf32>
    %c0_40 = arith.constant 0 : index
    %c120 = arith.constant 120 : index
    %c0_41 = arith.constant 0 : index
    %80 = vector.load %arg7[%c0_40, %c120, %c0_41] : memref<2x128x32xf32, #tpu.memory_space<vmem>>, vector<1x1x32xf32>
    %81 = vector.shape_cast %80 : vector<1x1x32xf32> to vector<1x32xf32>
    %82 = vector.broadcast %81 : vector<1x32xf32> to vector<16x32xf32>
    %83 = arith.addf %79, %82 : vector<16x32xf32>
    %84 = arith.truncf %83 : vector<16x32xf32> to vector<16x32xbf16>
    %cst_42 = arith.constant dense<0.000000e+00> : vector<48x32xf32>
    %85 = tpu.matmul %1, %84, %cst_42 {dimension_numbers = #tpu.dot_dimension_numbers<[1], [0], [0], [1], [0, 0, 1, 1], [], []>} : vector<48x16xbf16>, vector<16x32xbf16>, vector<48x32xf32> -> vector<48x32xf32>
    %86 = arith.truncf %83 : vector<16x32xf32> to vector<16x32xbf16>
    %cst_43 = arith.constant dense<0.000000e+00> : vector<48x32xf32>
    %87 = tpu.matmul %3, %86, %cst_43 {dimension_numbers = #tpu.dot_dimension_numbers<[1], [0], [0], [1], [0, 0, 1, 1], [], []>} : vector<48x16xbf16>, vector<16x32xbf16>, vector<48x32xf32> -> vector<48x32xf32>
    %c0_44 = arith.constant 0 : index
    %c0_45 = arith.constant 0 : index
    %c0_46 = arith.constant 0 : index
    %88 = vector.load %arg8[%c0_44, %c0_45, %c0_46] : memref<2x112x16xf32, #tpu.memory_space<vmem>>, vector<1x32x16xf32>
    %89 = vector.shape_cast %88 : vector<1x32x16xf32> to vector<32x16xf32>
    %90 = arith.truncf %85 : vector<48x32xf32> to vector<48x32xbf16>
    %91 = arith.truncf %89 : vector<32x16xf32> to vector<32x16xbf16>
    %cst_47 = arith.constant dense<0.000000e+00> : vector<48x16xf32>
    %92 = tpu.matmul %90, %91, %cst_47 {dimension_numbers = #tpu.dot_dimension_numbers<[1], [0], [0], [1], [0, 0, 1, 1], [], []>} : vector<48x32xbf16>, vector<32x16xbf16>, vector<48x16xf32> -> vector<48x16xf32>
    %c0_48 = arith.constant 0 : index
    %c32_49 = arith.constant 32 : index
    %c0_50 = arith.constant 0 : index
    %93 = vector.load %arg8[%c0_48, %c32_49, %c0_50] : memref<2x112x16xf32, #tpu.memory_space<vmem>>, vector<1x32x16xf32>
    %94 = vector.shape_cast %93 : vector<1x32x16xf32> to vector<32x16xf32>
    %95 = arith.truncf %87 : vector<48x32xf32> to vector<48x32xbf16>
    %96 = arith.truncf %94 : vector<32x16xf32> to vector<32x16xbf16>
    %cst_51 = arith.constant dense<0.000000e+00> : vector<48x16xf32>
    %97 = tpu.matmul %95, %96, %cst_51 {dimension_numbers = #tpu.dot_dimension_numbers<[1], [0], [0], [1], [0, 0, 1, 1], [], []>} : vector<48x32xbf16>, vector<32x16xbf16>, vector<48x16xf32> -> vector<48x16xf32>
    %98 = arith.addf %92, %97 : vector<48x16xf32>
    %c0_52 = arith.constant 0 : index
    %c64_53 = arith.constant 64 : index
    %c0_54 = arith.constant 0 : index
    %99 = vector.load %arg8[%c0_52, %c64_53, %c0_54] : memref<2x112x16xf32, #tpu.memory_space<vmem>>, vector<1x16x16xf32>
    %100 = vector.shape_cast %99 : vector<1x16x16xf32> to vector<16x16xf32>
    %101 = arith.truncf %22 : vector<48x16xf32> to vector<48x16xbf16>
    %102 = arith.truncf %100 : vector<16x16xf32> to vector<16x16xbf16>
    %cst_55 = arith.constant dense<0.000000e+00> : vector<48x16xf32>
    %103 = tpu.matmul %101, %102, %cst_55 {dimension_numbers = #tpu.dot_dimension_numbers<[1], [0], [0], [1], [0, 0, 1, 1], [], []>} : vector<48x16xbf16>, vector<16x16xbf16>, vector<48x16xf32> -> vector<48x16xf32>
    %104 = arith.addf %98, %103 : vector<48x16xf32>
    %c0_56 = arith.constant 0 : index
    %c96_57 = arith.constant 96 : index
    %c0_58 = arith.constant 0 : index
    %105 = vector.load %arg8[%c0_56, %c96_57, %c0_58] : memref<2x112x16xf32, #tpu.memory_space<vmem>>, vector<1x1x16xf32>
    %106 = vector.shape_cast %105 : vector<1x1x16xf32> to vector<1x16xf32>
    %107 = vector.broadcast %106 : vector<1x16xf32> to vector<48x16xf32>
    %108 = arith.addf %104, %107 : vector<48x16xf32>
    %109 = arith.negf %108 : vector<48x16xf32>
    %110 = math.exp %109 : vector<48x16xf32>
    %cst_59 = arith.constant 1.000000e+00 : f32
    %111 = vector.broadcast %cst_59 : f32 to vector<48x16xf32>
    %112 = arith.addf %111, %110 : vector<48x16xf32>
    %113 = arith.divf %111, %112 : vector<48x16xf32>
    %114 = arith.mulf %108, %113 : vector<48x16xf32>
    %c0_60 = arith.constant 0 : index
    %c80 = arith.constant 80 : index
    %c0_61 = arith.constant 0 : index
    %115 = vector.load %arg8[%c0_60, %c80, %c0_61] : memref<2x112x16xf32, #tpu.memory_space<vmem>>, vector<1x16x16xf32>
    %116 = vector.shape_cast %115 : vector<1x16x16xf32> to vector<16x16xf32>
    %117 = arith.truncf %114 : vector<48x16xf32> to vector<48x16xbf16>
    %118 = arith.truncf %116 : vector<16x16xf32> to vector<16x16xbf16>
    %cst_62 = arith.constant dense<0.000000e+00> : vector<48x16xf32>
    %119 = tpu.matmul %117, %118, %cst_62 {dimension_numbers = #tpu.dot_dimension_numbers<[1], [0], [0], [1], [0, 0, 1, 1], [], []>} : vector<48x16xbf16>, vector<16x16xbf16>, vector<48x16xf32> -> vector<48x16xf32>
    %c0_63 = arith.constant 0 : index
    %c104_64 = arith.constant 104 : index
    %c0_65 = arith.constant 0 : index
    %120 = vector.load %arg8[%c0_63, %c104_64, %c0_65] : memref<2x112x16xf32, #tpu.memory_space<vmem>>, vector<1x1x16xf32>
    %121 = vector.shape_cast %120 : vector<1x1x16xf32> to vector<1x16xf32>
    %122 = vector.broadcast %121 : vector<1x16xf32> to vector<48x16xf32>
    %123 = arith.addf %119, %122 : vector<48x16xf32>
    %124 = arith.addf %22, %123 : vector<48x16xf32>
    %125 = arith.truncf %23 : vector<16x16xf32> to vector<16x16xbf16>
    %126 = arith.truncf %83 : vector<16x32xf32> to vector<16x32xbf16>
    %cst_66 = arith.constant dense<0.000000e+00> : vector<16x32xf32>
    %127 = tpu.matmul %125, %126, %cst_66 {dimension_numbers = #tpu.dot_dimension_numbers<[1], [0], [0], [1], [0, 0, 1, 1], [], []>} : vector<16x16xbf16>, vector<16x32xbf16>, vector<16x32xf32> -> vector<16x32xf32>
    %c1 = arith.constant 1 : index
    %c0_67 = arith.constant 0 : index
    %c0_68 = arith.constant 0 : index
    %128 = vector.load %arg7[%c1, %c0_67, %c0_68] : memref<2x128x32xf32, #tpu.memory_space<vmem>>, vector<1x32x32xf32>
    %129 = vector.shape_cast %128 : vector<1x32x32xf32> to vector<32x32xf32>
    %130 = arith.truncf %83 : vector<16x32xf32> to vector<16x32xbf16>
    %131 = arith.truncf %129 : vector<32x32xf32> to vector<32x32xbf16>
    %cst_69 = arith.constant dense<0.000000e+00> : vector<16x32xf32>
    %132 = tpu.matmul %130, %131, %cst_69 {dimension_numbers = #tpu.dot_dimension_numbers<[1], [0], [0], [1], [0, 0, 1, 1], [], []>} : vector<16x32xbf16>, vector<32x32xbf16>, vector<16x32xf32> -> vector<16x32xf32>
    %c1_70 = arith.constant 1 : index
    %c32_71 = arith.constant 32 : index
    %c0_72 = arith.constant 0 : index
    %133 = vector.load %arg7[%c1_70, %c32_71, %c0_72] : memref<2x128x32xf32, #tpu.memory_space<vmem>>, vector<1x32x32xf32>
    %134 = vector.shape_cast %133 : vector<1x32x32xf32> to vector<32x32xf32>
    %135 = arith.truncf %127 : vector<16x32xf32> to vector<16x32xbf16>
    %136 = arith.truncf %134 : vector<32x32xf32> to vector<32x32xbf16>
    %cst_73 = arith.constant dense<0.000000e+00> : vector<16x32xf32>
    %137 = tpu.matmul %135, %136, %cst_73 {dimension_numbers = #tpu.dot_dimension_numbers<[1], [0], [0], [1], [0, 0, 1, 1], [], []>} : vector<16x32xbf16>, vector<32x32xbf16>, vector<16x32xf32> -> vector<16x32xf32>
    %138 = arith.addf %132, %137 : vector<16x32xf32>
    %c1_74 = arith.constant 1 : index
    %c96_75 = arith.constant 96 : index
    %c0_76 = arith.constant 0 : index
    %139 = vector.load %arg7[%c1_74, %c96_75, %c0_76] : memref<2x128x32xf32, #tpu.memory_space<vmem>>, vector<1x1x32xf32>
    %140 = vector.shape_cast %139 : vector<1x1x32xf32> to vector<1x32xf32>
    %141 = vector.broadcast %140 : vector<1x32xf32> to vector<16x32xf32>
    %142 = arith.addf %138, %141 : vector<16x32xf32>
    %143 = arith.negf %142 : vector<16x32xf32>
    %144 = math.exp %143 : vector<16x32xf32>
    %cst_77 = arith.constant 1.000000e+00 : f32
    %145 = vector.broadcast %cst_77 : f32 to vector<16x32xf32>
    %146 = arith.addf %145, %144 : vector<16x32xf32>
    %147 = arith.divf %145, %146 : vector<16x32xf32>
    %148 = arith.mulf %142, %147 : vector<16x32xf32>
    %c1_78 = arith.constant 1 : index
    %c64_79 = arith.constant 64 : index
    %c0_80 = arith.constant 0 : index
    %149 = vector.load %arg7[%c1_78, %c64_79, %c0_80] : memref<2x128x32xf32, #tpu.memory_space<vmem>>, vector<1x32x32xf32>
    %150 = vector.shape_cast %149 : vector<1x32x32xf32> to vector<32x32xf32>
    %151 = arith.truncf %148 : vector<16x32xf32> to vector<16x32xbf16>
    %152 = arith.truncf %150 : vector<32x32xf32> to vector<32x32xbf16>
    %cst_81 = arith.constant dense<0.000000e+00> : vector<16x32xf32>
    %153 = tpu.matmul %151, %152, %cst_81 {dimension_numbers = #tpu.dot_dimension_numbers<[1], [0], [0], [1], [0, 0, 1, 1], [], []>} : vector<16x32xbf16>, vector<32x32xbf16>, vector<16x32xf32> -> vector<16x32xf32>
    %c1_82 = arith.constant 1 : index
    %c104_83 = arith.constant 104 : index
    %c0_84 = arith.constant 0 : index
    %154 = vector.load %arg7[%c1_82, %c104_83, %c0_84] : memref<2x128x32xf32, #tpu.memory_space<vmem>>, vector<1x1x32xf32>
    %155 = vector.shape_cast %154 : vector<1x1x32xf32> to vector<1x32xf32>
    %156 = vector.broadcast %155 : vector<1x32xf32> to vector<16x32xf32>
    %157 = arith.addf %153, %156 : vector<16x32xf32>
    %158 = arith.addf %83, %157 : vector<16x32xf32>
    %cst_85 = arith.constant dense<0.000000e+00> : vector<16xf32>
    %159 = vector.multi_reduction <add>, %158, %cst_85 [1] : vector<16x32xf32> to vector<16xf32>
    %160 = vector.shape_cast %159 : vector<16xf32> to vector<16x1xf32>
    %cst_86 = arith.constant 3.200000e+01 : f32
    %161 = vector.broadcast %cst_86 : f32 to vector<16x1xf32>
    %162 = arith.divf %160, %161 : vector<16x1xf32>
    %163 = vector.broadcast %162 : vector<16x1xf32> to vector<16x32xf32>
    %164 = arith.subf %158, %163 : vector<16x32xf32>
    %165 = arith.mulf %164, %164 : vector<16x32xf32>
    %cst_87 = arith.constant dense<0.000000e+00> : vector<16xf32>
    %166 = vector.multi_reduction <add>, %165, %cst_87 [1] : vector<16x32xf32> to vector<16xf32>
    %167 = vector.shape_cast %166 : vector<16xf32> to vector<16x1xf32>
    %cst_88 = arith.constant 3.200000e+01 : f32
    %168 = vector.broadcast %cst_88 : f32 to vector<16x1xf32>
    %169 = arith.divf %167, %168 : vector<16x1xf32>
    %170 = vector.broadcast %162 : vector<16x1xf32> to vector<16x32xf32>
    %171 = arith.subf %158, %170 : vector<16x32xf32>
    %cst_89 = arith.constant 9.99999974E-6 : f32
    %172 = vector.broadcast %cst_89 : f32 to vector<16x1xf32>
    %173 = arith.addf %169, %172 : vector<16x1xf32>
    %174 = math.rsqrt %173 : vector<16x1xf32>
    %175 = vector.broadcast %174 : vector<16x1xf32> to vector<16x32xf32>
    %176 = arith.mulf %171, %175 : vector<16x32xf32>
    %c1_90 = arith.constant 1 : index
    %c112_91 = arith.constant 112 : index
    %c0_92 = arith.constant 0 : index
    %177 = vector.load %arg7[%c1_90, %c112_91, %c0_92] : memref<2x128x32xf32, #tpu.memory_space<vmem>>, vector<1x1x32xf32>
    %178 = vector.shape_cast %177 : vector<1x1x32xf32> to vector<1x32xf32>
    %179 = vector.broadcast %178 : vector<1x32xf32> to vector<16x32xf32>
    %180 = arith.mulf %176, %179 : vector<16x32xf32>
    %c1_93 = arith.constant 1 : index
    %c120_94 = arith.constant 120 : index
    %c0_95 = arith.constant 0 : index
    %181 = vector.load %arg7[%c1_93, %c120_94, %c0_95] : memref<2x128x32xf32, #tpu.memory_space<vmem>>, vector<1x1x32xf32>
    %182 = vector.shape_cast %181 : vector<1x1x32xf32> to vector<1x32xf32>
    %183 = vector.broadcast %182 : vector<1x32xf32> to vector<16x32xf32>
    %184 = arith.addf %180, %183 : vector<16x32xf32>
    %185 = arith.truncf %184 : vector<16x32xf32> to vector<16x32xbf16>
    %cst_96 = arith.constant dense<0.000000e+00> : vector<48x32xf32>
    %186 = tpu.matmul %1, %185, %cst_96 {dimension_numbers = #tpu.dot_dimension_numbers<[1], [0], [0], [1], [0, 0, 1, 1], [], []>} : vector<48x16xbf16>, vector<16x32xbf16>, vector<48x32xf32> -> vector<48x32xf32>
    %187 = arith.truncf %184 : vector<16x32xf32> to vector<16x32xbf16>
    %cst_97 = arith.constant dense<0.000000e+00> : vector<48x32xf32>
    %188 = tpu.matmul %3, %187, %cst_97 {dimension_numbers = #tpu.dot_dimension_numbers<[1], [0], [0], [1], [0, 0, 1, 1], [], []>} : vector<48x16xbf16>, vector<16x32xbf16>, vector<48x32xf32> -> vector<48x32xf32>
    %c1_98 = arith.constant 1 : index
    %c0_99 = arith.constant 0 : index
    %c0_100 = arith.constant 0 : index
    %189 = vector.load %arg8[%c1_98, %c0_99, %c0_100] : memref<2x112x16xf32, #tpu.memory_space<vmem>>, vector<1x32x16xf32>
    %190 = vector.shape_cast %189 : vector<1x32x16xf32> to vector<32x16xf32>
    %191 = arith.truncf %186 : vector<48x32xf32> to vector<48x32xbf16>
    %192 = arith.truncf %190 : vector<32x16xf32> to vector<32x16xbf16>
    %cst_101 = arith.constant dense<0.000000e+00> : vector<48x16xf32>
    %193 = tpu.matmul %191, %192, %cst_101 {dimension_numbers = #tpu.dot_dimension_numbers<[1], [0], [0], [1], [0, 0, 1, 1], [], []>} : vector<48x32xbf16>, vector<32x16xbf16>, vector<48x16xf32> -> vector<48x16xf32>
    %c1_102 = arith.constant 1 : index
    %c32_103 = arith.constant 32 : index
    %c0_104 = arith.constant 0 : index
    %194 = vector.load %arg8[%c1_102, %c32_103, %c0_104] : memref<2x112x16xf32, #tpu.memory_space<vmem>>, vector<1x32x16xf32>
    %195 = vector.shape_cast %194 : vector<1x32x16xf32> to vector<32x16xf32>
    %196 = arith.truncf %188 : vector<48x32xf32> to vector<48x32xbf16>
    %197 = arith.truncf %195 : vector<32x16xf32> to vector<32x16xbf16>
    %cst_105 = arith.constant dense<0.000000e+00> : vector<48x16xf32>
    %198 = tpu.matmul %196, %197, %cst_105 {dimension_numbers = #tpu.dot_dimension_numbers<[1], [0], [0], [1], [0, 0, 1, 1], [], []>} : vector<48x32xbf16>, vector<32x16xbf16>, vector<48x16xf32> -> vector<48x16xf32>
    %199 = arith.addf %193, %198 : vector<48x16xf32>
    %c1_106 = arith.constant 1 : index
    %c64_107 = arith.constant 64 : index
    %c0_108 = arith.constant 0 : index
    %200 = vector.load %arg8[%c1_106, %c64_107, %c0_108] : memref<2x112x16xf32, #tpu.memory_space<vmem>>, vector<1x16x16xf32>
    %201 = vector.shape_cast %200 : vector<1x16x16xf32> to vector<16x16xf32>
    %202 = arith.truncf %124 : vector<48x16xf32> to vector<48x16xbf16>
    %203 = arith.truncf %201 : vector<16x16xf32> to vector<16x16xbf16>
    %cst_109 = arith.constant dense<0.000000e+00> : vector<48x16xf32>
    %204 = tpu.matmul %202, %203, %cst_109 {dimension_numbers = #tpu.dot_dimension_numbers<[1], [0], [0], [1], [0, 0, 1, 1], [], []>} : vector<48x16xbf16>, vector<16x16xbf16>, vector<48x16xf32> -> vector<48x16xf32>
    %205 = arith.addf %199, %204 : vector<48x16xf32>
    %c1_110 = arith.constant 1 : index
    %c96_111 = arith.constant 96 : index
    %c0_112 = arith.constant 0 : index
    %206 = vector.load %arg8[%c1_110, %c96_111, %c0_112] : memref<2x112x16xf32, #tpu.memory_space<vmem>>, vector<1x1x16xf32>
    %207 = vector.shape_cast %206 : vector<1x1x16xf32> to vector<1x16xf32>
    %208 = vector.broadcast %207 : vector<1x16xf32> to vector<48x16xf32>
    %209 = arith.addf %205, %208 : vector<48x16xf32>
    %210 = arith.negf %209 : vector<48x16xf32>
    %211 = math.exp %210 : vector<48x16xf32>
    %cst_113 = arith.constant 1.000000e+00 : f32
    %212 = vector.broadcast %cst_113 : f32 to vector<48x16xf32>
    %213 = arith.addf %212, %211 : vector<48x16xf32>
    %214 = arith.divf %212, %213 : vector<48x16xf32>
    %215 = arith.mulf %209, %214 : vector<48x16xf32>
    %c1_114 = arith.constant 1 : index
    %c80_115 = arith.constant 80 : index
    %c0_116 = arith.constant 0 : index
    %216 = vector.load %arg8[%c1_114, %c80_115, %c0_116] : memref<2x112x16xf32, #tpu.memory_space<vmem>>, vector<1x16x16xf32>
    %217 = vector.shape_cast %216 : vector<1x16x16xf32> to vector<16x16xf32>
    %218 = arith.truncf %215 : vector<48x16xf32> to vector<48x16xbf16>
    %219 = arith.truncf %217 : vector<16x16xf32> to vector<16x16xbf16>
    %cst_117 = arith.constant dense<0.000000e+00> : vector<48x16xf32>
    %220 = tpu.matmul %218, %219, %cst_117 {dimension_numbers = #tpu.dot_dimension_numbers<[1], [0], [0], [1], [0, 0, 1, 1], [], []>} : vector<48x16xbf16>, vector<16x16xbf16>, vector<48x16xf32> -> vector<48x16xf32>
    %c1_118 = arith.constant 1 : index
    %c104_119 = arith.constant 104 : index
    %c0_120 = arith.constant 0 : index
    %221 = vector.load %arg8[%c1_118, %c104_119, %c0_120] : memref<2x112x16xf32, #tpu.memory_space<vmem>>, vector<1x1x16xf32>
    %222 = vector.shape_cast %221 : vector<1x1x16xf32> to vector<1x16xf32>
    %223 = vector.broadcast %222 : vector<1x16xf32> to vector<48x16xf32>
    %224 = arith.addf %220, %223 : vector<48x16xf32>
    %225 = arith.addf %124, %224 : vector<48x16xf32>
    %c0_121 = arith.constant 0 : index
    %c0_122 = arith.constant 0 : index
    %226 = vector.load %arg9[%c0_121, %c0_122] : memref<48x16xf32, #tpu.memory_space<vmem>>, vector<16x16xf32>
    %227 = arith.truncf %225 : vector<48x16xf32> to vector<48x16xbf16>
    %228 = arith.truncf %226 : vector<16x16xf32> to vector<16x16xbf16>
    %cst_123 = arith.constant dense<0.000000e+00> : vector<48x16xf32>
    %229 = tpu.matmul %227, %228, %cst_123 {dimension_numbers = #tpu.dot_dimension_numbers<[1], [0], [0], [1], [0, 0, 1, 1], [], []>} : vector<48x16xbf16>, vector<16x16xbf16>, vector<48x16xf32> -> vector<48x16xf32>
    %c16 = arith.constant 16 : index
    %c0_124 = arith.constant 0 : index
    %230 = vector.load %arg9[%c16, %c0_124] : memref<48x16xf32, #tpu.memory_space<vmem>>, vector<1x16xf32>
    %231 = vector.broadcast %230 : vector<1x16xf32> to vector<48x16xf32>
    %232 = arith.addf %229, %231 : vector<48x16xf32>
    %233 = arith.negf %232 : vector<48x16xf32>
    %234 = math.exp %233 : vector<48x16xf32>
    %cst_125 = arith.constant 1.000000e+00 : f32
    %235 = vector.broadcast %cst_125 : f32 to vector<48x16xf32>
    %236 = arith.addf %235, %234 : vector<48x16xf32>
    %237 = arith.divf %235, %236 : vector<48x16xf32>
    %238 = arith.mulf %232, %237 : vector<48x16xf32>
    %c24 = arith.constant 24 : index
    %c0_126 = arith.constant 0 : index
    %239 = vector.load %arg9[%c24, %c0_126] : memref<48x16xf32, #tpu.memory_space<vmem>>, vector<1x16xf32>
    %240 = vector.broadcast %239 : vector<1x16xf32> to vector<48x16xf32>
    %241 = arith.mulf %238, %240 : vector<48x16xf32>
    %cst_127 = arith.constant dense<0.000000e+00> : vector<48xf32>
    %242 = vector.multi_reduction <add>, %241, %cst_127 [1] : vector<48x16xf32> to vector<48xf32>
    %243 = vector.shape_cast %242 : vector<48xf32> to vector<48x1xf32>
    %c32_128 = arith.constant 32 : index
    %c0_129 = arith.constant 0 : index
    %244 = vector.load %arg9[%c32_128, %c0_129] : memref<48x16xf32, #tpu.memory_space<vmem>>, vector<1x1xf32>
    %245 = vector.broadcast %244 : vector<1x1xf32> to vector<48x1xf32>
    %246 = arith.addf %243, %245 : vector<48x1xf32>
    %247 = arith.subf %1, %3 : vector<48x16xbf16>
    %c0_130 = arith.constant 0 : index
    %c0_131 = arith.constant 0 : index
    %c0_132 = arith.constant 0 : index
    %248 = vector.load %arg2[%c0_130, %c0_131, %c0_132] : memref<1x16x3xf32, #tpu.memory_space<vmem>>, vector<1x16x3xf32>
    %249 = vector.shape_cast %248 : vector<1x16x3xf32> to vector<16x3xf32>
    %250 = arith.truncf %249 : vector<16x3xf32> to vector<16x3xbf16>
    %cst_133 = arith.constant dense<0.000000e+00> : vector<48x3xf32>
    %251 = tpu.matmul %247, %250, %cst_133 {dimension_numbers = #tpu.dot_dimension_numbers<[1], [0], [0], [1], [0, 0, 1, 1], [], []>} : vector<48x16xbf16>, vector<16x3xbf16>, vector<48x3xf32> -> vector<48x3xf32>
    %252 = arith.mulf %251, %251 : vector<48x3xf32>
    %cst_134 = arith.constant dense<0.000000e+00> : vector<48xf32>
    %253 = vector.multi_reduction <add>, %252, %cst_134 [1] : vector<48x3xf32> to vector<48xf32>
    %254 = vector.shape_cast %253 : vector<48xf32> to vector<48x1xf32>
    %cst_135 = arith.constant 1.000000e-16 : f32
    %255 = vector.broadcast %cst_135 : f32 to vector<48x1xf32>
    %256 = arith.addf %254, %255 : vector<48x1xf32>
    %257 = math.rsqrt %256 : vector<48x1xf32>
    %258 = vector.broadcast %257 : vector<48x1xf32> to vector<48x3xf32>
    %259 = arith.mulf %251, %258 : vector<48x3xf32>
    %260 = vector.broadcast %246 : vector<48x1xf32> to vector<48x3xf32>
    %261 = arith.mulf %260, %259 : vector<48x3xf32>
    %262 = arith.truncf %261 : vector<48x3xf32> to vector<48x3xbf16>
    %cst_136 = arith.constant dense<0.000000e+00> : vector<16x3xf32>
    %263 = tpu.matmul %3, %262, %cst_136 {dimension_numbers = #tpu.dot_dimension_numbers<[0], [0], [1], [1], [0, 1, 1, 1], [], []>} : vector<48x16xbf16>, vector<48x3xbf16>, vector<16x3xf32> -> vector<16x3xf32>
    %c0_137 = arith.constant 0 : index
    %c0_138 = arith.constant 0 : index
    %c0_139 = arith.constant 0 : index
    %264 = vector.load %arg10[%c0_137, %c0_138, %c0_139] : memref<1x16x3xf32, #tpu.memory_space<vmem>>, vector<1x16x3xf32>
    %265 = vector.shape_cast %264 : vector<1x16x3xf32> to vector<16x3xf32>
    %266 = vector.shape_cast %263 : vector<16x3xf32> to vector<1x16x3xf32>
    tpu.vector_store %arg10[%c0_137, %c0_138, %c0_139], %266 {strides = array<i32>} : memref<1x16x3xf32, #tpu.memory_space<vmem>>, vector<1x16x3xf32>,
    return
  }
  func.func @transform_0(%arg0: i32) -> (i32, i32, i32) {
    %c0_i32 = arith.constant 0 : i32
    %c0_i32_0 = arith.constant 0 : i32
    %c0_i32_1 = arith.constant 0 : i32
    return %arg0, %c0_i32, %c0_i32_0 : i32, i32, i32
  }
  func.func @transform_1(%arg0: i32) -> (i32, i32, i32) {
    %c0_i32 = arith.constant 0 : i32
    %c0_i32_0 = arith.constant 0 : i32
    %c0_i32_1 = arith.constant 0 : i32
    return %arg0, %c0_i32, %c0_i32_0 : i32, i32, i32
  }
  func.func @transform_2(%arg0: i32) -> (i32, i32, i32) {
    %c0_i32 = arith.constant 0 : i32
    %c0_i32_0 = arith.constant 0 : i32
    %c0_i32_1 = arith.constant 0 : i32
    return %arg0, %c0_i32, %c0_i32_0 : i32, i32, i32
  }
  func.func @transform_3(%arg0: i32) -> (i32, i32, i32) {
    %c0_i32 = arith.constant 0 : i32
    %c0_i32_0 = arith.constant 0 : i32
    %c0_i32_1 = arith.constant 0 : i32
    return %arg0, %c0_i32, %c0_i32_0 : i32, i32, i32
  }
  func.func @transform_4(%arg0: i32) -> (i32, i32, i32) {
    %c0_i32 = arith.constant 0 : i32
    %c0_i32_0 = arith.constant 0 : i32
    %c0_i32_1 = arith.constant 0 : i32
    return %arg0, %c0_i32, %c0_i32_0 : i32, i32, i32
  }
  func.func @transform_5(%arg0: i32) -> (i32, i32) {
    %c0_i32 = arith.constant 0 : i32
    %c0_i32_0 = arith.constant 0 : i32
    %c0_i32_1 = arith.constant 0 : i32
    return %c0_i32, %c0_i32_0 : i32, i32
  }
  func.func @transform_6(%arg0: i32) -> (i32, i32, i32) {
    %c0_i32 = arith.constant 0 : i32
    %c0_i32_0 = arith.constant 0 : i32
    %c0_i32_1 = arith.constant 0 : i32
    %c0_i32_2 = arith.constant 0 : i32
    return %c0_i32, %c0_i32_0, %c0_i32_1 : i32, i32, i32
  }
  func.func @transform_7(%arg0: i32) -> (i32, i32, i32) {
    %c0_i32 = arith.constant 0 : i32
    %c0_i32_0 = arith.constant 0 : i32
    %c0_i32_1 = arith.constant 0 : i32
    %c0_i32_2 = arith.constant 0 : i32
    return %c0_i32, %c0_i32_0, %c0_i32_1 : i32, i32, i32
  }
  func.func @transform_8(%arg0: i32) -> (i32, i32) {
    %c0_i32 = arith.constant 0 : i32
    %c0_i32_0 = arith.constant 0 : i32
    %c0_i32_1 = arith.constant 0 : i32
    return %c0_i32, %c0_i32_0 : i32, i32
  }
  func.func @transform_9(%arg0: i32) -> (i32, i32, i32) {
    %c0_i32 = arith.constant 0 : i32
    %c0_i32_0 = arith.constant 0 : i32
    %c0_i32_1 = arith.constant 0 : i32
    return %arg0, %c0_i32, %c0_i32_0 : i32, i32, i32
  }
}

</mosaic_0001>

<bundles_post_ra>
// kernel: tpu_custom_call.1
= control target key start
LH: loop header
LB: loop body
LE: loop exit
PB: predicated region body
PF: predicated region fallthrough
CT: control target
= control target key end

     0   :  { %s3372_s30 = smov 0   ;;  %s4051_s0 = inlined_call_operand.vmem [shape: f32[8,16,8], index: 0, kind: input, shape index: {}]   ;;  %s4052_s1 = inlined_call_operand.vmem [shape: f32[8,16,3], index: 1, kind: input, shape index: {}]   ;;  %s4053_s2 = inlined_call_operand.vmem [shape: f32[8,48,1], index: 2, kind: input, shape index: {}]   ;;  %s4054_s3 = inlined_call_operand.vmem [shape: bf16[8,48,16], index: 3, kind: input, shape index: {}]   ;;  %s4055_s4 = inlined_call_operand.vmem [shape: bf16[8,48,16], index: 4, kind: input, shape index: {}]   ;;  %s4056_s5 = inlined_call_operand.vmem [shape: f32[16,32], index: 5, kind: input, shape index: {}]   ;;  %s4057_s6 = inlined_call_operand.vmem [shape: f32[2,128,32], index: 6, kind: input, shape index: {}]   ;;  %s4058_s7 = inlined_call_operand.vmem [shape: f32[2,112,16], index: 7, kind: input, shape index: {}]   ;;  %s4059_s8 = inlined_call_operand.vmem [shape: f32[48,16], index: 8, kind: input, shape index: {}]   ;;  %s4060_s9 = inlined_call_operand.vmem [shape: f32[8,16,3], index: 9, kind: output, shape index: {}]  }
   0x1 LB: > { %s2638_s10 = sadd.s32 4294967295, %s3317_s30   ;;  %p2642_p0 = scmp.ge.s32.totalorder %s3317_s30, 1  ;;  %s3317_s30 = sphi %s3372_s30, %s19_s30  }
   0x2   : > { %p327_p1 = scmp.lt.s32.totalorder %s3317_s30, 9 }
   0x4   : > { %p328_p2 = pnand %p2642_p0, %p327_p1 }
   0x5   : > { %p383_p3 = scmp.lt.s32.totalorder (!%p328_p2), %s2638_s10, 7 }
   0x6   : > { %331 = sbr.rel (%p328_p2) target bundleno = 3900 (0xf3c), region = 56 }
   0xb   : > { %v428_v0 = vld [vmem:[%s4056_s5] sm:$0xff]  ;;  %vm440_vm0 = vcmask 1043456   ;;  %v3319_v1 = vmov 0.0   ;;  %vm3320_vm1 = vmmov 0   ;;  %s4062_s10 = smov (!%p383_p3, %s2638_s10), 7  ;;  %vm436_vm2 = vcmask 64512  }
   0xc   : > { %2880 = vmatprep.subr.bf16.mxu0 %v3319_v1  ;;  %v430_v2 = vpack.c.bf16 %v428_v0, %v428_v0  ;;  %2882 = vmatprep.mubr.msk.bf16.mxu0 %vm3320_vm1, %v3319_v1  ;;  %s3171_s13 = smul.u32 24, %s4062_s10  ;;  %s3393_s14 = sshll.u32 %s4062_s10, 4  ;;  %v702_v32 = vld [vmem:[%s4057_s6 + $0x10] sm:$0xff]  ;;  %v703_v33 = vld [vmem:[%s4057_s6 + $0x18] sm:$0xff]  ;;  %vm608_vm3 = vcmask 392192   ;;  %v700_v35 = vld [vmem:[%s4057_s6] sm:$0xff] }
   0xd   : > { %2886 = vmatprep.subr.bf16.mxu1 %v3319_v1  ;;  %2892 = vmatprep.mubr.msk.bf16.mxu1 %vm3320_vm1, %v3319_v1  ;;  %s387_s17 = scalar_lea.vmem %s4051_s0, %s3393_s14  ;;  %v705_v34 = vpack.c.bf16 %v703_v33, %v702_v32  ;;  %v701_v36 = vld [vmem:[%s4057_s6 + $0x8] sm:$0xff]  ;;  %vm713_vm4 = vcmask 261120   ;;  %vm655_vm5 = vcmask 130048   ;;  %v708_v52 = vld [vmem:[%s4057_s6 + $0x30] sm:$0xff]  ;;  %v709_v53 = vld [vmem:[%s4057_s6 + $0x38] sm:$0xff]  ;;  %s3170_s18 = smul.u32 48, %s4062_s10 }
   0xe   : > { %v442_v3 = vsel %vm440_vm0, %v430_v2, 0  ;;  %s407_s20 = scalar_lea.vmem %s4055_s4, %s3171_s13  ;;  %v426_v4 = vld [vmem:[%s387_s17] sm:$0xff]  ;;  %v427_v5 = vld [vmem:[%s387_s17 + $0x8] sm:$0xff]  ;;  %s402_s23 = scalar_lea.vmem %s4054_s3, %s3171_s13  ;;  %v704_v38 = vpack.c.bf16 %v701_v36, %v700_v35  ;;  %v712_v54 = vpack.c.bf16 %v709_v53, %v708_v52  ;;  %vm2416_vm6 = vcmask 23552  }
   0xf   : > { %2881 = vmatpush3.bf16.msra.mxu0 %v442_v3  ;;  %v420_v6 = vld [vmem:[%s407_s20] sm:$0xf]  ;;  %v421_v7 = vld [vmem:[%s407_s20 + $0x4] sm:$0xf]  ;;  %v3406_v8 = vld [vmem:[%s407_s20 + $0x8] sm:$0xf]  ;;  %v429_v9 = vpack.c.bf16 %v427_v5, %v426_v4  ;;  %s397_s21 = scalar_lea.vmem %s4053_s2, %s3170_s18  ;;  %s392_s24 = scalar_lea.vmem %s4052_s1, %s3393_s14 }
  0x10   : > { %2896 = vmatprep.subr.bf16.mxu0 %v3319_v1  ;;  %v3408_v10 = vcombine.low %v420_v6, %v421_v7  ;;  %v3410_v11 = vld [vmem:[%s407_s20 + $0xc] sm:$0xf]  ;;  %v3412_v12 = vld [vmem:[%s407_s20 + $0x10] sm:$0xf]  ;;  %v3414_v13 = vld [vmem:[%s407_s20 + $0x14] sm:$0xf]  ;;  %s412_s17 = scalar_lea.vmem %s4060_s9, %s3393_s14 }
  0x11   : > { %v3418_v14 = vcombine.low %v3406_v8, %v3410_v11  ;;  %v3420_v15 = vld [vmem:[%s402_s23 + $0x10] sm:$0xf]  ;;  %v3422_v16 = vld [vmem:[%s402_s23 + $0x14] sm:$0xf]  ;;  %v3424_v17 = vld [vmem:[%s402_s23 + $0x8] sm:$0xf]  ;;  %v3452_v29 = vcombine.low %v3412_v12, %v3414_v13 }
  0x12   : > { %2883 = vmatmul.mubr.msk.bf16.vlgmr.msra.gmra.mxu0 %vm436_vm2, %v429_v9  ;;  %574 = vxpose.xlu0.c.b16.start [1/3] (short) (narrow) %v3408_v10, 16  ;;  %v3429_v18 = vcombine.low %v3420_v15, %v3422_v16  ;;  %v2324_v19 = vsub.bf16 %v3420_v15, %v3412_v12  ;;  %v2325_v20 = vsub.bf16 %v3422_v16, %v3414_v13  ;;  %v3435_v21 = vld [vmem:[%s402_s23 + $0xc] sm:$0xf]  ;;  %v414_v23 = vld [vmem:[%s402_s23] sm:$0xf]  ;;  %v825_v4 = vld [vmem:[%s4057_s6 + $0x50] sm:$0xff] }
  0x13   : > { %v2322_v22 = vsub.bf16 %v3424_v17, %v3406_v8  ;;  %v2323_v24 = vsub.bf16 %v3435_v21, %v3410_v11  ;;  %v415_v25 = vld [vmem:[%s402_s23 + $0x4] sm:$0xf]  ;;  %v2320_v26 = vsub.bf16 %v414_v23, %v420_v6  ;;  %2898 = vmatprep.mubr.msk.bf16.mxu0 %vm3320_vm1, %v3319_v1  ;;  %v3446_v27 = vcombine.low %v3424_v17, %v3435_v21  ;;  %v2652_v39 = vld [vmem:[%s4056_s5 + $0x8] ss:$0 sm:$0xff]  ;;  %v826_v5 = vld [vmem:[%s4057_s6 + $0x58] sm:$0xff] }
  0x14   : > { %2887 = vmatpush3.bf16.msra.mxu1 %v3429_v18  ;;  %v2321_v28 = vsub.bf16 %v415_v25, %v421_v7  ;;  %v3457_v31 = vcombine.low %v414_v23, %v415_v25  ;;  %v706_v55 = vld [vmem:[%s4057_s6 + $0x20] sm:$0xff]  ;;  %v707_v56 = vld [vmem:[%s4057_s6 + $0x28] sm:$0xff]  ;;  %v829_v6 = vpack.c.bf16 %v826_v5, %v825_v4  ;;  %v2760_v8 = vld [vmem:[%s4058_s7 + $0xd8] ss:$0 sm:$0xff] }
  0x15   : > { %2888 = vmatprep.subr.bf16.mxu1 %v3319_v1  ;;  %v711_v57 = vpack.c.bf16 %v707_v56, %v706_v55  ;;  %v823_v7 = vld [vmem:[%s4057_s6 + $0x40] sm:$0xff]  ;;  %v824_v9 = vld [vmem:[%s4057_s6 + $0x48] sm:$0xff] }
  0x16   : > { %575 = vxpose.xlu0.c.b16.cont [2/3] (short) (narrow) %v3418_v14, 16  ;;  %v3454_v30 = vcombine.low %v2320_v26, %v2321_v28  ;;  %v828_v23 = vpack.c.bf16 %v824_v9, %v823_v7  ;;  %v2665_v26 = vld [vmem:[%s4057_s6 + $0x60] ss:$0 sm:$0xff]  ;;  %v2668_v53 = vld [vmem:[%s4057_s6 + $0x68] ss:$0 sm:$0xff] }
  0x18   : > { %2889 = vmatpush3.bf16.msra.mxu1 %v3446_v27 }
  0x19   : > { %2890 = vmatprep.subr.bf16.mxu1 %v3319_v1 }
  0x1a   : > { %576 = vxpose.xlu0.c.b16.end [3/3] (short) (narrow) %v3452_v29, 16 }
  0x1c   : > { %2891 = vmatpush3.bf16.msra.mxu1 %v3457_v31 }
  0x1d   : > { %2910 = vmatprep.subr.bf16.mxu1 %v3319_v1 }
  0x74   : > { %v3475_v37 = vpop.trf.xlu0 }
  0x75   : > { %2893 = vmatmul.mubr.msk.bf16.vlgmr.msra.gmra.mxu1 %vm608_vm3, %v3475_v37 }
  0x76   : > { %2911 = vmatpush3.bf16.msra.mxu1 %v705_v34  ;;  %2914 = vmatprep.mubr.msk.bf16.mxu1 %vm3320_vm1, %v3319_v1 }
  0x77   : > { %2912 = vmatprep.subr.bf16.mxu1 %v3319_v1 }
  0x7a   : > { %2913 = vmatpush3.bf16.msra.mxu1 %v704_v38 }
  0x7b   : > { %2926 = vmatprep.subr.bf16.mxu1 %v3319_v1 }
  0xd2   : > { %v478_v40 = vpop.f32.mrf.mxu0 }
  0xd3   : > { %v3486_v42 = vadd.f32 %v2652_v39, %v478_v40 }
  0xd4   : > { %v2884_v41 = vpop.f32.mrf.mxu0 }
  0xd6   : > { %v481_v43 = vpop.f32.mrf.mxu0 }
  0xd7   : > { %v3488_v44 = vadd.f32 %v2652_v39, %v481_v43 }
  0xd8   : > { %v2885_v45 = vpop.f32.mrf.mxu0 }
  0xd9   : > { %v654_v46 = vpack.c.bf16 %v3488_v44, %v3486_v42 }
  0xdb   : > { %2915 = vmatmul.mubr.msk.bf16.vlgmr.msra.gmra.mxu1 %vm713_vm4, %v654_v46  ;;  %2897 = vmatpush3.bf16.msra.mxu0 %v654_v46 }
  0xdc   : > { %2902 = vmatprep.subr.bf16.mxu0 %v3319_v1  ;;  %2928 = vmatprep.mubr.msk.bf16.mxu1 %vm3320_vm1, %v3319_v1 }
 0x135   : > { %v646_v47 = vpop.f32.mrf.mxu1 }
 0x137   : > { %v2894_v48 = vpop.f32.mrf.mxu1 }
 0x139   : > { %v649_v49 = vpop.f32.mrf.mxu1 }
 0x13a   : > { %v3496_v50 = vpack.c.bf16 %v649_v49, %v646_v47 }
 0x13b   : > { %v2895_v51 = vpop.f32.mrf.mxu1 }
 0x13c   : > { %2899 = vmatmul.mubr.msk.bf16.vlgmr.msra.gmra.mxu0 %vm655_vm5, %v3496_v50 }
 0x13d   : > { %2906 = vmatprep.mubr.msk.bf16.mxu0 %vm3320_vm1, %v3319_v1  ;;  %2903 = vmatpush3.bf16.msra.mxu0 %v712_v54 }
 0x13e   : > { %2904 = vmatprep.subr.bf16.mxu0 %v3319_v1 }
 0x141   : > { %2905 = vmatpush3.bf16.msra.mxu0 %v711_v57 }
 0x142   : > { %2918 = vmatprep.subr.bf16.mxu0 %v3319_v1 }
 0x19b   : > { %v795_v58 = vpop.f32.mrf.mxu1 }
 0x19d   : > { %v2916_v59 = vpop.f32.mrf.mxu1 }
 0x19f   : > { %v798_v60 = vpop.f32.mrf.mxu1 }
 0x1a1   : > { %v2917_v61 = vpop.f32.mrf.mxu1 }
 0x1fc   : > { %v693_v62 = vpop.f32.mrf.mxu0 }
 0x1fe   : > { %v2900_v63 = vpop.f32.mrf.mxu0 }
 0x200   : > { %v696_v0 = vpop.f32.mrf.mxu0 }
 0x201   : > { %v710_v2 = vpack.c.bf16 %v696_v0, %v693_v62 }
 0x202   : > { %v2901_v3 = vpop.f32.mrf.mxu0 }
 0x203   : > { %2907 = vmatmul.mubr.msk.bf16.vlgmr.msra.gmra.mxu0 %vm713_vm4, %v710_v2 }
 0x204   : > { %2922 = vmatprep.mubr.msk.bf16.mxu0 %vm3320_vm1, %v3319_v1  ;;  %2919 = vmatpush3.bf16.msra.mxu0 %v829_v6 }
 0x205   : > { %2920 = vmatprep.subr.bf16.mxu0 %v3319_v1 }
 0x208   : > { %2921 = vmatpush3.bf16.msra.mxu0 %v828_v23 }
 0x209   : > { %2940 = vmatprep.subr.bf16.mxu0 %v3319_v1 }
 0x2c3   : > { %v751_v25 = vpop.f32.mrf.mxu0 }
 0x2c4   : > { %v796_v28 = vadd.f32 %v795_v58, %v751_v25  ;;  %v3321_v25 = vmov 0  }
 0x2c5   : > { %v2908_v32 = vpop.f32.mrf.mxu0  ;;  %3183 = vset.pattern.permute.xlu1 %v3321_v25  ;;  %3184 = vset.pattern.permute.xlu0 %v3321_v25 }
 0x2c6   : > { %v807_v33 = vadd.f32 %v2665_v26, %v796_v28  ;;  %v487_v28 = vld [vmem:[%s397_s21 + $0x10] sm:$0xff]  ;;  %v488_v32 = vld [vmem:[%s397_s21 + $0x18] sm:$0xff] }
 0x2c7   : > { %v754_v34 = vpop.f32.mrf.mxu0 }
 0x2c8   : > { %v2666_v35 = vmul.f32 -1.442695, %v807_v33  ;;  %v799_v36 = vadd.f32 %v798_v60, %v754_v34  ;;  %v490_v34 = vld [vmem:[%s397_s21 + $0x28] sm:$0xff] }
 0x2c9   : > { %v2909_v38 = vpop.f32.mrf.mxu0 }
 0x2ca   : > { %3191 = vpow2.f32 %v2666_v35  ;;  %v808_v39 = vadd.f32 %v2665_v26, %v799_v36  ;;  %v486_v26 = vld [vmem:[%s397_s21 + $0x8] sm:$0xff] }
 0x2cc   : > { %v2667_v40 = vmul.f32 -1.442695, %v808_v39 }
 0x2ce   : > { %3193 = vpow2.f32 %v2667_v40 }
 0x2d7   : > { %v3192_v41 = vpop.eup %3191 }
 0x2d8   : > { %v815_v43 = vadd.f32 1.0, %v3192_v41 }
 0x2da   : > { %3195 = vrcp.f32 %v815_v43 }
 0x2db   : > { %v3194_v45 = vpop.eup %3193 }
 0x2dc   : > { %v816_v46 = vadd.f32 1.0, %v3194_v45 }
 0x2de   : > { %3197 = vrcp.f32 %v816_v46  ;;  %v2670_v46 = vld [vmem:[%s4057_s6 + $0x70] ss:$0 sm:$0xff] }
 0x2e7   : > { %v3196_v47 = vpop.eup %3195 }
 0x2e8   : > { %v821_v49 = vmul.f32 %v3196_v47, %v807_v33  ;;  %v489_v33 = vld [vmem:[%s397_s21 + $0x20] sm:$0xff] }
 0x2eb   : > { %v3198_v48 = vpop.eup %3197 }
 0x2ec   : > { %v822_v51 = vmul.f32 %v3198_v48, %v808_v39 }
 0x2ee   : > { %v827_v52 = vpack.c.bf16 %v822_v51, %v821_v49  ;;  %v2671_v51 = vld [vmem:[%s4057_s6 + $0x78] ss:$0 sm:$0xff] }
 0x2f0   : > { %2923 = vmatmul.mubr.msk.bf16.vlgmr.msra.gmra.mxu0 %vm713_vm4, %v827_v52 }
 0x2f1   : > { %2942 = vmatprep.mubr.msk.bf16.mxu0 %vm3320_vm1, %v3319_v1 }
 0x3b0   : > { %v872_v54 = vpop.f32.mrf.mxu0 }
 0x3b1   : > { %v873_v55 = vadd.f32 %v2668_v53, %v872_v54 }
 0x3b2   : > { %v2924_v56 = vpop.f32.mrf.mxu0 }
 0x3b3   : > { %v879_v57 = vadd.f32 %v873_v55, %v3486_v42  ;;  %v1066_v56 = vld [vmem:[%s4058_s7 + $0x30] sm:$0xff] }
 0x3b4   : > { %v875_v58 = vpop.f32.mrf.mxu0 }
 0x3b5   : > { %v876_v59 = vadd.f32 %v2668_v53, %v875_v58  ;;  %v881_v60 = vsel %vm713_vm4, %v879_v57, 0.0 }
 0x3b6   : > { %882 = vadd.xlane.f32.xlu1 %v881_v60  ;;  %v2925_v61 = vpop.f32.mrf.mxu0  ;;  %v1058_v60 = vld [vmem:[%s4058_s7 + $0x18] sm:$0xff] }
 0x3b7   : > { %v880_v62 = vadd.f32 %v876_v59, %v3488_v44  ;;  %v485_v44 = vld [vmem:[%s397_s21] sm:$0xff]  ;;  %v1057_v59 = vld [vmem:[%s4058_s7 + $0x10] sm:$0xff] }
 0x3b8   : > { %v1063_v61 = vpack.c.bf16 %v1058_v60, %v1057_v59 }
 0x3b9   : > { %v884_v63 = vsel %vm713_vm4, %v880_v62, 0.0 }
 0x3ba   : > { %885 = vadd.xlane.f32.xlu1 %v884_v63  ;;  %v1065_v63 = vld [vmem:[%s4058_s7 + $0x28] sm:$0xff] }
 0x43f   : > { %v883_v0 = vpop.xlane.xlu1 %882 }
 0x440   : > { %v888_v2 = vmul.f32 0.03125, %v883_v0  ;;  %v1055_v0 = vld [vmem:[%s4058_s7] sm:$0xff] }
 0x442   : > { %v890_v3 = vsub.f32 %v879_v57, %v888_v2  ;;  %v1067_v57 = vld [vmem:[%s4058_s7 + $0x38] sm:$0xff] }
 0x443   : > { %v886_v4 = vpop.xlane.xlu1 %885  ;;  %v1072_v58 = vpack.c.bf16 %v1067_v57, %v1066_v56 }
 0x444   : > { %v889_v5 = vmul.f32 0.03125, %v886_v4  ;;  %v892_v6 = vmul.f32 %v890_v3, %v890_v3 }
 0x446   : > { %v891_v7 = vsub.f32 %v880_v62, %v889_v5  ;;  %v894_v42 = vsel %vm713_vm4, %v892_v6, 0.0  ;;  %v1064_v62 = vld [vmem:[%s4058_s7 + $0x20] sm:$0xff] }
 0x447   : > { %895 = vadd.xlane.f32.xlu1 %v894_v42  ;;  %v1071_v2 = vpack.c.bf16 %v1065_v63, %v1064_v62 }
 0x448   : > { %v893_v9 = vmul.f32 %v891_v7, %v891_v7 }
 0x44a   : > { %v897_v23 = vsel %vm713_vm4, %v893_v9, 0.0 }
 0x44b   : > { %898 = vadd.xlane.f32.xlu0 %v897_v23 }
 0x458   : > { %494 = vperm.xlu1 %3183, %v485_v44  }
 0x45c   : > { %504 = vperm.xlu1 %3183, %v487_v28  }
 0x460   : > { %509 = vperm.xlu1 %3183, %v488_v32  }
 0x461   : > { %499 = vperm.xlu0 %3184, %v486_v26  }
 0x464   : > { %514 = vperm.xlu1 %3183, %v489_v33  }
 0x468   : > { %519 = vperm.xlu1 %3183, %v490_v34  }
 0x4d0   : > { %v896_v35 = vpop.xlane.xlu1 %895 }
 0x4d1   : > { %v900_v36 = vmul.f32 0.03125, %v896_v35  ;;  %v1205_v35 = vld [vmem:[%s4058_s7 + $0x40] sm:$0xff] }
 0x4d3   : > { %v902_v38 = vadd.f32 1e-05, %v900_v36  ;;  %v1206_v36 = vld [vmem:[%s4058_s7 + $0x48] sm:$0xff] }
 0x4d4   : > { %v899_v39 = vpop.xlane.xlu0 %898  ;;  %v495_v5 = vpop.permute.xlu1 %494 }
 0x4d5   : > { %3199 = vrsqrt.f32 %v902_v38  ;;  %v901_v40 = vmul.f32 0.03125, %v899_v39 }
 0x4d7   : > { %v903_v41 = vadd.f32 1e-05, %v901_v40 }
 0x4d8   : > { %v505_v6 = vpop.permute.xlu1 %504 }
 0x4d9   : > { %3201 = vrsqrt.f32 %v903_v41 }
 0x4dc   : > { %v500_v42 = vpop.permute.xlu0 %499  ;;  %v510_v23 = vpop.permute.xlu1 %509 }
 0x4e0   : > { %v515_v38 = vpop.permute.xlu1 %514 }
 0x4e2   : > { %v3200_v43 = vpop.eup %3199 }
 0x4e3   : > { %v906_v45 = vmul.f32 %v3200_v43, %v890_v3  ;;  %v1056_v3 = vld [vmem:[%s4058_s7 + $0x8] sm:$0xff] }
 0x4e4   : > { %v1062_v4 = vpack.c.bf16 %v1056_v3, %v1055_v0  ;;  %v520_v62 = vpop.permute.xlu1 %519 }
 0x4e5   : > { %v913_v49 = vmul.f32 %v2670_v46, %v906_v45 }
 0x4e6   : > { %v3202_v47 = vpop.eup %3201 }
 0x4e7   : > { %v907_v48 = vmul.f32 %v3202_v47, %v891_v7  ;;  %v3558_v53 = vadd.f32 %v2671_v51, %v913_v49  ;;  %v2654_v7 = vld [vmem:[%s4059_s8 + $0x28] ss:$0 sm:$0xff]  ;;  %v1210_v49 = vpack.c.bf16 %v1206_v36, %v1205_v35 }
 0x4e8   : > { %v526_v9 = vsub.f32 %v495_v5, %v2654_v7  ;;  %v527_v25 = vsub.f32 %v500_v42, %v2654_v7  ;;  %v528_v40 = vsub.f32 %v505_v6, %v2654_v7  ;;  %v529_v41 = vsub.f32 %v510_v23, %v2654_v7 }
 0x4e9   : > { %v914_v52 = vmul.f32 %v2670_v46, %v907_v48  ;;  %v531_v42 = vsub.f32 %v520_v62, %v2654_v7 }
 0x4ea   : > { %v532_v44 = vmul.f32 -4.5, %v526_v9  ;;  %v533_v32 = vmul.f32 -4.5, %v527_v25  ;;  %v534_v57 = vmul.f32 -4.5, %v528_v40 }
 0x4eb   : > { %v3560_v54 = vadd.f32 %v2671_v51, %v914_v52 }
 0x4ec   : > { %v538_v39 = vmul.f32 %v532_v44, %v526_v9  ;;  %v539_v46 = vmul.f32 %v533_v32, %v527_v25 }
 0x4ed   : > { %v3564_v55 = vpack.c.bf16 %v3560_v54, %v3558_v53 }
 0x4ee   : > { %v544_v56 = vmul.f32 1.442695, %v538_v39 }
 0x4ef   : > { %2927 = vmatpush3.bf16.msra.mxu1 %v3564_v55  ;;  %2941 = vmatpush3.bf16.msra.mxu0 %v3564_v55 }
 0x4f0   : > { %2954 = vmatprep.subr.bf16.mxu1 %v3319_v1  ;;  %2970 = vmatprep.subr.bf16.mxu0 %v3319_v1  ;;  %3203 = vpow2.f32 %v544_v56 }
 0x4f2   : > { %2929 = vmatmul.mubr.msk.bf16.vlgmr.msra.gmra.mxu1 %vm655_vm5, %v3457_v31  ;;  %2943 = vmatmul.mubr.msk.bf16.vlgmr.msra.gmra.mxu0 %vm655_vm5, %v3408_v10 }
 0x4f3   : > { %2932 = vmatprep.mubr.msk.bf16.mxu1 %vm3320_vm1, %v3319_v1  ;;  %2946 = vmatprep.mubr.msk.bf16.mxu0 %vm3320_vm1, %v3319_v1 }
 0x4f4   : > { %2955 = vmatpush3.bf16.msra.mxu1 %v1072_v58  ;;  %2971 = vmatpush3.bf16.msra.mxu0 %v1063_v61  ;;  %v535_v58 = vmul.f32 -4.5, %v529_v41  ;;  %v546_v61 = vmul.f32 1.442695, %v539_v46 }
 0x4f5   : > { %2956 = vmatprep.subr.bf16.mxu1 %v3319_v1  ;;  %2972 = vmatprep.subr.bf16.mxu0 %v3319_v1 }
 0x4f6   : > { %v541_v3 = vmul.f32 %v535_v58, %v529_v41  ;;  %3205 = vpow2.f32 %v546_v61 }
 0x4f8   : > { %2957 = vmatpush3.bf16.msra.mxu1 %v1071_v2  ;;  %2973 = vmatpush3.bf16.msra.mxu0 %v1062_v4  ;;  %v540_v2 = vmul.f32 %v534_v57, %v528_v40  ;;  %v530_v4 = vsub.f32 %v515_v38, %v2654_v7  ;;  %v537_v7 = vmul.f32 -4.5, %v531_v42 }
 0x4f9   : > { %2986 = vmatprep.subr.bf16.mxu1 %v3319_v1  ;;  %3000 = vmatprep.subr.bf16.mxu0 %v3319_v1 }
 0x4fa   : > { %2933 = vmatmul.mubr.msk.bf16.gmra.mxu1 %vm655_vm5, %v3446_v27  ;;  %2947 = vmatmul.mubr.msk.bf16.gmra.mxu0 %vm655_vm5, %v3418_v14  ;;  %v543_v41 = vmul.f32 %v537_v7, %v531_v42 }
 0x4fb   : > { %2936 = vmatprep.mubr.msk.bf16.mxu1 %vm3320_vm1, %v3319_v1  ;;  %2950 = vmatprep.mubr.msk.bf16.mxu0 %vm3320_vm1, %v3319_v1 }
 0x502   : > { %2937 = vmatmul.mubr.msk.bf16.gmra.mxu1 %vm655_vm5, %v3429_v18  ;;  %2951 = vmatmul.mubr.msk.bf16.gmra.mxu0 %vm655_vm5, %v3452_v29 }
 0x503   : > { %2958 = vmatprep.mubr.msk.bf16.mxu1 %vm3320_vm1, %v3319_v1  ;;  %2974 = vmatprep.mubr.msk.bf16.mxu0 %vm3320_vm1, %v3319_v1 }
 0x5b2   : > { %v966_v26 = vpop.f32.mrf.mxu1  ;;  %v1032_v28 = vpop.f32.mrf.mxu0 }
 0x5b4   : > { %v2930_v33 = vpop.f32.mrf.mxu1  ;;  %v2944_v34 = vpop.f32.mrf.mxu0 }
 0x5b5   : > { %v550_v34 = vmul.f32 1.442695, %v541_v3  ;;  %v2699_v3 = vld [vmem:[%s4057_s6 + $0x80] sm:$0xff] }
 0x5b6   : > { %v969_v43 = vpop.f32.mrf.mxu1  ;;  %v1035_v45 = vpop.f32.mrf.mxu0 }
 0x5b7   : > { %v1059_v47 = vpack.c.bf16 %v969_v43, %v966_v26  ;;  %v1068_v48 = vpack.c.bf16 %v1035_v45, %v1032_v28  ;;  %v548_v26 = vmul.f32 1.442695, %v540_v2  ;;  %v536_v28 = vmul.f32 -4.5, %v530_v4 }
 0x5b8   : > { %v2931_v51 = vpop.f32.mrf.mxu1  ;;  %v2945_v52 = vpop.f32.mrf.mxu0 }
 0x5b9   : > { %2959 = vmatmul.mubr.msk.bf16.vlgmr.msra.gmra.mxu1 %vm713_vm4, %v1068_v48  ;;  %2975 = vmatmul.mubr.msk.bf16.vlgmr.msra.gmra.mxu0 %vm713_vm4, %v1059_v47  ;;  %3207 = vpow2.f32 %v548_v26  ;;  %v542_v38 = vmul.f32 %v536_v28, %v530_v4  ;;  %v554_v51 = vmul.f32 1.442695, %v543_v41  ;;  %v2700_v4 = vld [vmem:[%s4057_s6 + $0x88] sm:$0xff] }
 0x5ba   : > { %v974_v59 = vpop.f32.mrf.mxu1  ;;  %v1040_v60 = vpop.f32.mrf.mxu0  ;;  %2962 = vmatprep.mubr.msk.bf16.mxu1 %vm3320_vm1, %v3319_v1  ;;  %2978 = vmatprep.mubr.msk.bf16.mxu0 %vm3320_vm1, %v3319_v1  ;;  %3209 = vpow2.f32 %v550_v34 }
 0x5bb   : > { %2987 = vmatpush3.bf16.msra.mxu1 %v1210_v49  ;;  %v552_v48 = vmul.f32 1.442695, %v542_v38  ;;  %v3650_v49 = vpop.eup %3203 }
 0x5bc   : > { %v2934_v63 = vpop.f32.mrf.mxu1  ;;  %v2948_v0 = vpop.f32.mrf.mxu0  ;;  %3014 = vmatprep.subr.bf16.mxu1 %v3319_v1 }
 0x5bd   : > { %v3652_v52 = vpop.eup %3205  ;;  %3211 = vpow2.f32 %v552_v48  ;;  %v2701_v63 = vld [vmem:[%s4057_s6 + $0x90] sm:$0xff]  ;;  %v2702_v0 = vld [vmem:[%s4057_s6 + $0x98] sm:$0xff] }
 0x5be   : > { %v977_v5 = vpop.f32.mrf.mxu1  ;;  %v1043_v6 = vpop.f32.mrf.mxu0  ;;  %3213 = vpow2.f32 %v554_v51  ;;  %v1207_v56 = vpack.c.bf16 %v3652_v52, %v3650_v49  ;;  %v1466_v2 = vpack.c.bf16 %v2702_v0, %v2701_v63  ;;  %v2687_v63 = vld [vmem:[%s4058_s7 + $0x60] ss:$0 sm:$0xff] }
 0x5bf   : > { %v1060_v9 = vpack.c.bf16 %v977_v5, %v974_v59  ;;  %v1069_v23 = vpack.c.bf16 %v1043_v6, %v1040_v60  ;;  %v1465_v5 = vpack.c.bf16 %v2700_v4, %v2699_v3  ;;  %v1337_v6 = vld [vmem:[%s4058_s7 + $0x58] sm:$0xff] }
 0x5c0   : > { %v2935_v25 = vpop.f32.mrf.mxu1  ;;  %v2949_v44 = vpop.f32.mrf.mxu0 }
 0x5c1   : > { %2963 = vmatmul.mubr.msk.bf16.gmra.mxu1 %vm713_vm4, %v1069_v23  ;;  %2979 = vmatmul.mubr.msk.bf16.gmra.mxu0 %vm713_vm4, %v1060_v9 }
 0x5c2   : > { %v982_v32 = vpop.f32.mrf.mxu1  ;;  %v1048_v33 = vpop.f32.mrf.mxu0  ;;  %2966 = vmatprep.mubr.msk.bf16.mxu1 %vm3320_vm1, %v3319_v1  ;;  %2982 = vmatprep.mubr.msk.bf16.mxu0 %vm3320_vm1, %v3319_v1 }
 0x5c4   : > { %v2938_v35 = vpop.f32.mrf.mxu1  ;;  %v2952_v36 = vpop.f32.mrf.mxu0 }
 0x5c6   : > { %v985_v39 = vpop.f32.mrf.mxu1  ;;  %v1051_v40 = vpop.f32.mrf.mxu0 }
 0x5c7   : > { %v1061_v43 = vpack.c.bf16 %v985_v39, %v982_v32  ;;  %v1070_v45 = vpack.c.bf16 %v1051_v40, %v1048_v33  ;;  %v3660_v57 = vpop.eup %3207 }
 0x5c8   : > { %v2953_v46 = vpop.f32.mrf.mxu0  ;;  %v2939_v47 = vpop.f32.mrf.mxu1 }
 0x5c9   : > { %2967 = vmatmul.mubr.msk.bf16.gmra.mxu1 %vm713_vm4, %v1070_v45  ;;  %2983 = vmatmul.mubr.msk.bf16.gmra.mxu0 %vm713_vm4, %v1061_v43  ;;  %v3663_v58 = vpop.eup %3209 }
 0x5ca   : > { %2988 = vmatprep.mubr.msk.bf16.mxu1 %vm3320_vm1, %v3319_v1  ;;  %3002 = vmatprep.mubr.msk.bf16.mxu0 %vm3320_vm1, %v3319_v1  ;;  %v1208_v59 = vpack.c.bf16 %v3663_v58, %v3660_v57  ;;  %v3670_v60 = vpop.eup %3211 }
 0x5cb   : > { %v3672_v61 = vpop.eup %3213 }
 0x5cc   : > { %v1209_v62 = vpack.c.bf16 %v3672_v61, %v3670_v60 }
 0x5d1   : > { %2989 = vmatmul.mubr.msk.bf16.vlgmr.msra.gmra.mxu1 %vm655_vm5, %v1207_v56 }
 0x5d2   : > { %3015 = vmatpush3.bf16.msra.mxu1 %v3564_v55  ;;  %2992 = vmatprep.mubr.msk.bf16.mxu1 %vm3320_vm1, %v3319_v1 }
 0x5d3   : > { %3028 = vmatprep.subr.bf16.mxu1 %v3319_v1 }
 0x5d9   : > { %2993 = vmatmul.mubr.msk.bf16.gmra.mxu1 %vm655_vm5, %v1208_v59 }
 0x5da   : > { %2996 = vmatprep.mubr.msk.bf16.mxu1 %vm3320_vm1, %v3319_v1 }
 0x5e1   : > { %2997 = vmatmul.mubr.msk.bf16.gmra.mxu1 %vm655_vm5, %v1209_v62 }
 0x5e2   : > { %3016 = vmatprep.mubr.msk.bf16.mxu1 %vm3320_vm1, %v3319_v1 }
 0x5e9   : > { %3017 = vmatmul.mubr.msk.bf16.vlgmr.msra.gmra.mxu1 %vm655_vm5, %v3496_v50  ;;  %v1336_v50 = vld [vmem:[%s4058_s7 + $0x50] sm:$0xff] }
 0x5ea   : > { %3029 = vmatpush3.bf16.msra.mxu1 %v1466_v2  ;;  %3032 = vmatprep.mubr.msk.bf16.mxu1 %vm3320_vm1, %v3319_v1  ;;  %v1341_v42 = vpack.c.bf16 %v1337_v6, %v1336_v50 }
 0x5eb   : > { %3030 = vmatprep.subr.bf16.mxu1 %v3319_v1 }
 0x5ec   : > { %3001 = vmatpush3.bf16.msra.mxu0 %v1341_v42 }
 0x5ed   : > { %3020 = vmatprep.subr.bf16.mxu0 %v3319_v1 }
 0x5ee   : > { %3031 = vmatpush3.bf16.msra.mxu1 %v1465_v5 }
 0x5ef   : > { %3044 = vmatprep.subr.bf16.mxu1 %v3319_v1 }
 0x5f1   : > { %3033 = vmatmul.mubr.msk.bf16.vlgmr.msra.gmra.mxu1 %vm713_vm4, %v3564_v55 }
 0x5f2   : > { %3046 = vmatprep.mubr.msk.bf16.mxu1 %vm3320_vm1, %v3319_v1 }
 0x679   : > { %v1116_v9 = vpop.f32.mrf.mxu1  ;;  %v1182_v23 = vpop.f32.mrf.mxu0 }
 0x67a   : > { %v1183_v59 = vadd.f32 %v1182_v23, %v1116_v9 }
 0x67b   : > { %v2960_v25 = vpop.f32.mrf.mxu1  ;;  %v2976_v44 = vpop.f32.mrf.mxu0 }
 0x67d   : > { %v1119_v55 = vpop.f32.mrf.mxu1  ;;  %v1185_v26 = vpop.f32.mrf.mxu0 }
 0x67e   : > { %v1186_v3 = vadd.f32 %v1185_v26, %v1119_v55 }
 0x67f   : > { %v2961_v28 = vpop.f32.mrf.mxu1  ;;  %v2977_v32 = vpop.f32.mrf.mxu0 }
 0x681   : > { %v1124_v33 = vpop.f32.mrf.mxu1  ;;  %v1190_v34 = vpop.f32.mrf.mxu0 }
 0x682   : > { %v1191_v25 = vadd.f32 %v1190_v34, %v1124_v33 }
 0x683   : > { %v2964_v7 = vpop.f32.mrf.mxu1  ;;  %v2980_v35 = vpop.f32.mrf.mxu0 }
 0x685   : > { %v1127_v36 = vpop.f32.mrf.mxu1  ;;  %v1193_v38 = vpop.f32.mrf.mxu0 }
 0x686   : > { %v1194_v7 = vadd.f32 %v1193_v38, %v1127_v36 }
 0x687   : > { %v2965_v39 = vpop.f32.mrf.mxu1  ;;  %v2981_v40 = vpop.f32.mrf.mxu0 }
 0x689   : > { %v1132_v41 = vpop.f32.mrf.mxu1  ;;  %v1198_v43 = vpop.f32.mrf.mxu0 }
 0x68b   : > { %v2968_v45 = vpop.f32.mrf.mxu1  ;;  %v2984_v46 = vpop.f32.mrf.mxu0 }
 0x68c   : > { %v1199_v45 = vadd.f32 %v1198_v43, %v1132_v41 }
 0x68d   : > { %v1135_v47 = vpop.f32.mrf.mxu1  ;;  %v1201_v48 = vpop.f32.mrf.mxu0 }
 0x68f   : > { %v2969_v51 = vpop.f32.mrf.mxu1  ;;  %v2985_v56 = vpop.f32.mrf.mxu0 }
 0x691   : > { %v1254_v62 = vpop.f32.mrf.mxu1 }
 0x692   : > { %v1277_v0 = vadd.f32 %v1254_v62, %v1183_v59  ;;  %v1202_v59 = vadd.f32 %v1201_v48, %v1135_v47 }
 0x693   : > { %v2990_v2 = vpop.f32.mrf.mxu1 }
 0x694   : > { %v3711_v4 = vadd.f32 %v2687_v63, %v1277_v0 }
 0x695   : > { %v1257_v5 = vpop.f32.mrf.mxu1 }
 0x696   : > { %v2688_v50 = vmul.f32 -1.442695, %v3711_v4  ;;  %v1278_v6 = vadd.f32 %v1257_v5, %v1186_v3 }
 0x697   : > { %v2991_v42 = vpop.f32.mrf.mxu1 }
 0x698   : > { %3215 = vpow2.f32 %v2688_v50  ;;  %v1289_v44 = vadd.f32 %v2687_v63, %v1278_v6 }
 0x699   : > { %v1262_v28 = vpop.f32.mrf.mxu1 }
 0x69a   : > { %v2689_v9 = vmul.f32 -1.442695, %v1289_v44  ;;  %v1279_v23 = vadd.f32 %v1262_v28, %v1191_v25 }
 0x69b   : > { %v2994_v32 = vpop.f32.mrf.mxu1 }
 0x69c   : > { %3217 = vpow2.f32 %v2689_v9  ;;  %v3714_v35 = vadd.f32 %v2687_v63, %v1279_v23 }
 0x69d   : > { %v1265_v39 = vpop.f32.mrf.mxu1 }
 0x69e   : > { %v2690_v55 = vmul.f32 -1.442695, %v3714_v35  ;;  %v1280_v26 = vadd.f32 %v1265_v39, %v1194_v7 }
 0x69f   : > { %v2995_v40 = vpop.f32.mrf.mxu1 }
 0x6a0   : > { %3219 = vpow2.f32 %v2690_v55  ;;  %v1291_v46 = vadd.f32 %v2687_v63, %v1280_v26 }
 0x6a1   : > { %v1270_v51 = vpop.f32.mrf.mxu1 }
 0x6a2   : > { %v2691_v33 = vmul.f32 -1.442695, %v1291_v46  ;;  %v1281_v34 = vadd.f32 %v1270_v51, %v1199_v45  ;;  %v2705_v51 = vld [vmem:[%s4057_s6 + $0xb0] sm:$0xff] }
 0x6a3   : > { %v2998_v56 = vpop.f32.mrf.mxu1 }
 0x6a4   : > { %3221 = vpow2.f32 %v2691_v33  ;;  %v1292_v62 = vadd.f32 %v2687_v63, %v1281_v34  ;;  %v2706_v33 = vld [vmem:[%s4057_s6 + $0xb8] sm:$0xff] }
 0x6a5   : > { %v3216_v0 = vpop.eup %3215  ;;  %v1273_v36 = vpop.f32.mrf.mxu1 }
 0x6a6   : > { %v1312_v38 = vadd.f32 1.0, %v3216_v0  ;;  %v2692_v2 = vmul.f32 -1.442695, %v1292_v62  ;;  %v1282_v3 = vadd.f32 %v1273_v36, %v1202_v59 }
 0x6a7   : > { %v2999_v5 = vpop.f32.mrf.mxu1 }
 0x6a8   : > { %v1293_v50 = vadd.f32 %v2687_v63, %v1282_v3  ;;  %3223 = vpow2.f32 %v2692_v2  ;;  %v2703_v3 = vld [vmem:[%s4057_s6 + $0xa0] sm:$0xff]  ;;  %v2704_v5 = vld [vmem:[%s4057_s6 + $0xa8] sm:$0xff] }
 0x6a9   : > { %v3218_v6 = vpop.eup %3217  ;;  %v1453_v42 = vpop.f32.mrf.mxu1  ;;  %3225 = vrcp.f32 %v1312_v38  ;;  %v1473_v38 = vpack.c.bf16 %v2706_v33, %v2705_v51 }
 0x6aa   : > { %v1313_v41 = vadd.f32 1.0, %v3218_v6  ;;  %v2693_v43 = vmul.f32 -1.442695, %v1293_v50 }
 0x6ab   : > { %v3018_v25 = vpop.f32.mrf.mxu1 }
 0x6ac   : > { %3227 = vrcp.f32 %v1313_v41 }
 0x6ad   : > { %v3220_v28 = vpop.eup %3219  ;;  %3229 = vpow2.f32 %v2693_v43  ;;  %v1456_v47 = vpop.f32.mrf.mxu1 }
 0x6ae   : > { %v1314_v48 = vadd.f32 1.0, %v3220_v28 }
 0x6af   : > { %v3019_v9 = vpop.f32.mrf.mxu1 }
 0x6b0   : > { %3231 = vrcp.f32 %v1314_v48 }
 0x6b1   : > { %v3222_v23 = vpop.eup %3221  ;;  %v3717_v32 = vpop.f32.mrf.mxu1 }
 0x6b2   : > { %v1315_v7 = vadd.f32 1.0, %v3222_v23 }
 0x6b3   : > { %v3034_v39 = vpop.f32.mrf.mxu1 }
 0x6b4   : > { %3233 = vrcp.f32 %v1315_v7 }
 0x6b5   : > { %v3719_v63 = vpop.f32.mrf.mxu1  ;;  %v3224_v55 = vpop.eup %3223 }
 0x6b6   : > { %v3226_v26 = vpop.eup %3225  ;;  %v1316_v40 = vadd.f32 1.0, %v3224_v55 }
 0x6b7   : > { %v3035_v45 = vpop.f32.mrf.mxu1  ;;  %v1330_v59 = vmul.f32 %v3226_v26, %v3711_v4  ;;  %v1472_v4 = vpack.c.bf16 %v2704_v5, %v2703_v3  ;;  %v2710_v3 = vld [vmem:[%s4057_s6 + $0xe0] ss:$0 sm:$0xff] }
 0x6b8   : > { %3235 = vrcp.f32 %v1316_v40 }
 0x6b9   : > { %v3228_v34 = vpop.eup %3227 }
 0x6ba   : > { %v3230_v56 = vpop.eup %3229  ;;  %v1331_v0 = vmul.f32 %v3228_v34, %v1289_v44 }
 0x6bb   : > { %v1317_v36 = vadd.f32 1.0, %v3230_v56 }
 0x6bc   : > { %v1338_v2 = vpack.c.bf16 %v1331_v0, %v1330_v59 }
 0x6bd   : > { %3237 = vrcp.f32 %v1317_v36  ;;  %v3232_v6 = vpop.eup %3231 }
 0x6be   : > { %3003 = vmatmul.mubr.msk.bf16.vlgmr.msra.gmra.mxu0 %vm655_vm5, %v1338_v2  ;;  %v1332_v41 = vmul.f32 %v3232_v6, %v3714_v35  ;;  %v1471_v35 = vpack.c.bf16 %v1456_v47, %v1453_v42  ;;  %v2713_v42 = vld [vmem:[%s4057_s6 + $0xc0] sm:$0xff]  ;;  %v2714_v47 = vld [vmem:[%s4057_s6 + $0xc8] sm:$0xff] }
 0x6bf   : > { %3006 = vmatprep.mubr.msk.bf16.mxu0 %vm3320_vm1, %v3319_v1  ;;  %3021 = vmatpush3.bf16.msra.mxu0 %v1473_v38  ;;  %v1588_v39 = vpack.c.bf16 %v2714_v47, %v2713_v42 }
 0x6c0   : > { %3022 = vmatprep.subr.bf16.mxu0 %v3319_v1 }
 0x6c1   : > { %v3234_v44 = vpop.eup %3233 }
 0x6c2   : > { %v1333_v43 = vmul.f32 %v3234_v44, %v1291_v46  ;;  %v2715_v46 = vld [vmem:[%s4057_s6 + $0xd0] sm:$0xff] }
 0x6c3   : > { %3023 = vmatpush3.bf16.msra.mxu0 %v1472_v4 }
 0x6c4   : > { %v1339_v25 = vpack.c.bf16 %v1333_v43, %v1332_v41  ;;  %3036 = vmatprep.subr.bf16.mxu0 %v3319_v1 }
 0x6c5   : > { %v3236_v28 = vpop.eup %3235 }
 0x6c6   : > { %3007 = vmatmul.mubr.msk.bf16.gmra.mxu0 %vm655_vm5, %v1339_v25  ;;  %v1334_v9 = vmul.f32 %v3236_v28, %v1292_v62  ;;  %v2716_v62 = vld [vmem:[%s4057_s6 + $0xd8] sm:$0xff] }
 0x6c7   : > { %3010 = vmatprep.mubr.msk.bf16.mxu0 %vm3320_vm1, %v3319_v1 }
 0x6ca   : > { %v3238_v48 = vpop.eup %3237 }
 0x6cb   : > { %v1335_v23 = vmul.f32 %v3238_v48, %v1293_v50  ;;  %v1589_v50 = vpack.c.bf16 %v2716_v62, %v2715_v46 }
 0x6cd   : > { %v1340_v7 = vpack.c.bf16 %v1335_v23, %v1334_v9 }
 0x6cf   : > { %3011 = vmatmul.mubr.msk.bf16.gmra.mxu0 %vm655_vm5, %v1340_v7 }
 0x6d0   : > { %3024 = vmatprep.mubr.msk.bf16.mxu0 %vm3320_vm1, %v3319_v1 }
 0x6d7   : > { %3025 = vmatmul.mubr.msk.bf16.vlgmr.msra.gmra.mxu0 %vm713_vm4, %v1471_v35 }
 0x6d8   : > { %3040 = vmatprep.mubr.msk.bf16.mxu0 %vm3320_vm1, %v3319_v1  ;;  %3037 = vmatpush3.bf16.msra.mxu0 %v1589_v50 }
 0x6d9   : > { %3038 = vmatprep.subr.bf16.mxu0 %v3319_v1 }
 0x6dc   : > { %3039 = vmatpush3.bf16.msra.mxu0 %v1588_v39 }
 0x6dd   : > { %3058 = vmatprep.subr.bf16.mxu0 %v3319_v1 }
 0x77e   : > { %v3763_v55 = vpop.f32.mrf.mxu0 }
 0x780   : > { %v3004_v26 = vpop.f32.mrf.mxu0 }
 0x782   : > { %v3765_v40 = vpop.f32.mrf.mxu0 }
 0x784   : > { %v3005_v45 = vpop.f32.mrf.mxu0 }
 0x786   : > { %v3767_v51 = vpop.f32.mrf.mxu0 }
 0x788   : > { %v3008_v33 = vpop.f32.mrf.mxu0 }
 0x78a   : > { %v3769_v34 = vpop.f32.mrf.mxu0 }
 0x78c   : > { %v3009_v56 = vpop.f32.mrf.mxu0 }
 0x78f   : > { %v3771_v59 = vpop.f32.mrf.mxu0 }
 0x791   : > { %v3012_v0 = vpop.f32.mrf.mxu0 }
 0x793   : > { %v3773_v36 = vpop.f32.mrf.mxu0 }
 0x795   : > { %v3013_v38 = vpop.f32.mrf.mxu0 }
 0x797   : > { %v1511_v2 = vpop.f32.mrf.mxu0 }
 0x798   : > { %v1556_v5 = vadd.f32 %v3717_v32, %v1511_v2 }
 0x799   : > { %v3026_v6 = vpop.f32.mrf.mxu0 }
 0x79a   : > { %v1567_v4 = vadd.f32 %v2710_v3, %v1556_v5 }
 0x79b   : > { %v1514_v44 = vpop.f32.mrf.mxu0 }
 0x79c   : > { %v2711_v41 = vmul.f32 -1.442695, %v1567_v4  ;;  %v1559_v43 = vadd.f32 %v3719_v63, %v1514_v44  ;;  %v2718_v63 = vld [vmem:[%s4057_s6 + $0xe8] ss:$0 sm:$0xff] }
 0x79d   : > { %v3027_v25 = vpop.f32.mrf.mxu0 }
 0x79e   : > { %3239 = vpow2.f32 %v2711_v41  ;;  %v1568_v28 = vadd.f32 %v2710_v3, %v1559_v43 }
 0x7a0   : > { %v2712_v48 = vmul.f32 -1.442695, %v1568_v28 }
 0x7a2   : > { %3241 = vpow2.f32 %v2712_v48 }
 0x7ab   : > { %v3240_v9 = vpop.eup %3239 }
 0x7ac   : > { %v1575_v23 = vadd.f32 1.0, %v3240_v9 }
 0x7ae   : > { %3243 = vrcp.f32 %v1575_v23 }
 0x7af   : > { %v3242_v7 = vpop.eup %3241 }
 0x7b0   : > { %v1576_v35 = vadd.f32 1.0, %v3242_v7 }
 0x7b2   : > { %3245 = vrcp.f32 %v1576_v35 }
 0x7bb   : > { %v3244_v46 = vpop.eup %3243 }
 0x7bc   : > { %v1581_v32 = vmul.f32 %v3244_v46, %v1567_v4 }
 0x7bf   : > { %v3246_v62 = vpop.eup %3245 }
 0x7c0   : > { %v1582_v50 = vmul.f32 %v3246_v62, %v1568_v28 }
 0x7c2   : > { %v1587_v42 = vpack.c.bf16 %v1582_v50, %v1581_v32  ;;  %v2721_v50 = vld [vmem:[%s4057_s6 + $0xf0] ss:$0 sm:$0xff] }
 0x7c4   : > { %3041 = vmatmul.mubr.msk.bf16.vlgmr.msra.gmra.mxu0 %vm713_vm4, %v1587_v42 }
 0x7c5   : > { %3060 = vmatprep.mubr.msk.bf16.mxu0 %vm3320_vm1, %v3319_v1 }
 0x884   : > { %v1632_v47 = vpop.f32.mrf.mxu0 }
 0x885   : > { %v1633_v39 = vadd.f32 %v2718_v63, %v1632_v47 }
 0x886   : > { %v3042_v26 = vpop.f32.mrf.mxu0 }
 0x887   : > { %v1639_v45 = vadd.f32 %v1633_v39, %v3558_v53  ;;  %v2723_v39 = vld [vmem:[%s4057_s6 + $0xf8] ss:$0 sm:$0xff] }
 0x888   : > { %v1635_v33 = vpop.f32.mrf.mxu0 }
 0x889   : > { %v1636_v56 = vadd.f32 %v2718_v63, %v1635_v33  ;;  %v1641_v0 = vsel %vm713_vm4, %v1639_v45, 0.0 }
 0x88a   : > { %1642 = vadd.xlane.f32.xlu1 %v1641_v0  ;;  %v3043_v38 = vpop.f32.mrf.mxu0  ;;  %v2736_v0 = vld [vmem:[%s4058_s7 + $0xa0] sm:$0xff] }
 0x88b   : > { %v1640_v2 = vadd.f32 %v1636_v56, %v3560_v54  ;;  %v2737_v38 = vld [vmem:[%s4058_s7 + $0xa8] sm:$0xff] }
 0x88d   : > { %v1644_v3 = vsel %vm713_vm4, %v1640_v2, 0.0 }
 0x88e   : > { %1645 = vadd.xlane.f32.xlu0 %v1644_v3 }
 0x913   : > { %v1643_v5 = vpop.xlane.xlu1 %1642 }
 0x914   : > { %v1647_v6 = vmul.f32 0.03125, %v1643_v5  ;;  %v2731_v5 = vld [vmem:[%s4058_s7 + $0x78] sm:$0xff] }
 0x916   : > { %v1649_v4 = vsub.f32 %v1639_v45, %v1647_v6 }
 0x917   : > { %v1646_v44 = vpop.xlane.xlu0 %1645 }
 0x918   : > { %v1648_v41 = vmul.f32 0.03125, %v1646_v44  ;;  %v1651_v43 = vmul.f32 %v1649_v4, %v1649_v4 }
 0x91a   : > { %v1650_v25 = vsub.f32 %v1640_v2, %v1648_v41  ;;  %v1653_v53 = vsel %vm713_vm4, %v1651_v43, 0.0  ;;  %v1814_v2 = vpack.c.bf16 %v2737_v38, %v2736_v0 }
 0x91b   : > { %1654 = vadd.xlane.f32.xlu1 %v1653_v53  ;;  %v2745_v53 = vld [vmem:[%s4058_s7 + $0xb8] sm:$0xff] }
 0x91c   : > { %v1652_v28 = vmul.f32 %v1650_v25, %v1650_v25 }
 0x91e   : > { %v1656_v48 = vsel %vm713_vm4, %v1652_v28, 0.0 }
 0x91f   : > { %1657 = vadd.xlane.f32.xlu1 %v1656_v48 }
 0x9a4   : > { %v1655_v9 = vpop.xlane.xlu1 %1654 }
 0x9a5   : > { %v1659_v23 = vmul.f32 0.03125, %v1655_v9 }
 0x9a7   : > { %v1661_v54 = vadd.f32 1e-05, %v1659_v23 }
 0x9a8   : > { %v1658_v7 = vpop.xlane.xlu1 %1657 }
 0x9a9   : > { %3247 = vrsqrt.f32 %v1661_v54  ;;  %v1660_v35 = vmul.f32 0.03125, %v1658_v7 }
 0x9ab   : > { %v1662_v46 = vadd.f32 1e-05, %v1660_v35 }
 0x9ad   : > { %3249 = vrsqrt.f32 %v1662_v46 }
 0x9b6   : > { %v3248_v62 = vpop.eup %3247 }
 0x9b7   : > { %v1665_v32 = vmul.f32 %v3248_v62, %v1649_v4 }
 0x9b9   : > { %v1672_v47 = vmul.f32 %v2721_v50, %v1665_v32 }
 0x9ba   : > { %v3250_v42 = vpop.eup %3249 }
 0x9bb   : > { %v1666_v63 = vmul.f32 %v3250_v42, %v1650_v25  ;;  %v1679_v45 = vadd.f32 %v2723_v39, %v1672_v47  ;;  %v2744_v25 = vld [vmem:[%s4058_s7 + $0xb0] sm:$0xff] }
 0x9bc   : > { %v1952_v54 = vpack.c.bf16 %v2745_v53, %v2744_v25  ;;  %v2162_v25 = vld [vmem:[%s4059_s8 + $0x8] sm:$0xff] }
 0x9bd   : > { %v1673_v26 = vmul.f32 %v2721_v50, %v1666_v63 }
 0x9bf   : > { %v1680_v33 = vadd.f32 %v2723_v39, %v1673_v26 }
 0x9c1   : > { %v1681_v56 = vpack.c.bf16 %v1680_v33, %v1679_v45 }
 0x9c3   : > { %3045 = vmatpush3.bf16.msra.mxu1 %v1681_v56  ;;  %3059 = vmatpush3.bf16.msra.mxu0 %v1681_v56 }
 0x9c4   : > { %3072 = vmatprep.subr.bf16.mxu1 %v3319_v1  ;;  %3088 = vmatprep.subr.bf16.mxu0 %v3319_v1 }
 0x9c6   : > { %3047 = vmatmul.mubr.msk.bf16.vlgmr.msra.gmra.mxu1 %vm655_vm5, %v3457_v31  ;;  %3061 = vmatmul.mubr.msk.bf16.vlgmr.msra.gmra.mxu0 %vm655_vm5, %v3408_v10  ;;  %v2732_v10 = vld [vmem:[%s4058_s7 + $0x80] sm:$0xff]  ;;  %v2730_v31 = vld [vmem:[%s4058_s7 + $0x70] sm:$0xff] }
 0x9c7   : > { %3050 = vmatprep.mubr.msk.bf16.mxu1 %vm3320_vm1, %v3319_v1  ;;  %3064 = vmatprep.mubr.msk.bf16.mxu0 %vm3320_vm1, %v3319_v1  ;;  %v1804_v6 = vpack.c.bf16 %v2731_v5, %v2730_v31 }
 0x9c8   : > { %3073 = vmatpush3.bf16.msra.mxu1 %v1814_v2  ;;  %v2694_v2 = vld [vmem:[%s4058_s7 + $0x68] ss:$0 sm:$0xff] }
 0x9c9   : > { %3074 = vmatprep.subr.bf16.mxu1 %v3319_v1  ;;  %v1391_v5 = vadd.f32 %v2694_v2, %v3763_v55  ;;  %v1402_v55 = vadd.f32 %v2694_v2, %v3769_v34  ;;  %v1407_v34 = vadd.f32 %v2694_v2, %v3771_v59  ;;  %v2757_v59 = vld [vmem:[%s4058_s7 + $0xc0] sm:$0xff] }
 0x9ce   : > { %3051 = vmatmul.mubr.msk.bf16.gmra.mxu1 %vm655_vm5, %v3446_v27  ;;  %3065 = vmatmul.mubr.msk.bf16.gmra.mxu0 %vm655_vm5, %v3418_v14  ;;  %v2733_v14 = vld [vmem:[%s4058_s7 + $0x88] sm:$0xff] }
 0x9cf   : > { %3054 = vmatprep.mubr.msk.bf16.mxu1 %vm3320_vm1, %v3319_v1  ;;  %3068 = vmatprep.mubr.msk.bf16.mxu0 %vm3320_vm1, %v3319_v1  ;;  %v1805_v27 = vpack.c.bf16 %v2733_v14, %v2732_v10 }
 0x9d1   : > { %3089 = vmatpush3.bf16.msra.mxu0 %v1805_v27  ;;  %v1394_v27 = vadd.f32 %v2694_v2, %v3765_v40  ;;  %v3886_v40 = vadd.f32 %v3650_v49, %v1391_v5 }
 0x9d2   : > { %3090 = vmatprep.subr.bf16.mxu0 %v3319_v1 }
 0x9d5   : > { %3091 = vmatpush3.bf16.msra.mxu0 %v1804_v6  ;;  %v3883_v6 = vadd.f32 %v3652_v52, %v1394_v27 }
 0x9d6   : > { %3055 = vmatmul.mubr.msk.bf16.gmra.mxu1 %vm655_vm5, %v3429_v18  ;;  %3069 = vmatmul.mubr.msk.bf16.gmra.mxu0 %vm655_vm5, %v3452_v29  ;;  %v2734_v18 = vld [vmem:[%s4058_s7 + $0x90] sm:$0xff]  ;;  %v2735_v29 = vld [vmem:[%s4058_s7 + $0x98] sm:$0xff] }
 0x9d7   : > { %3076 = vmatprep.mubr.msk.bf16.mxu1 %vm3320_vm1, %v3319_v1  ;;  %3092 = vmatprep.mubr.msk.bf16.mxu0 %vm3320_vm1, %v3319_v1  ;;  %v1813_v3 = vpack.c.bf16 %v2735_v29, %v2734_v18 }
 0x9d8   : > { %3118 = vmatprep.subr.bf16.mxu0 %v3319_v1 }
 0x9d9   : > { %3075 = vmatpush3.bf16.msra.mxu1 %v1813_v3 }
 0x9da   : > { %3104 = vmatprep.subr.bf16.mxu1 %v3319_v1 }
 0xa86   : > { %v1716_v4 = vpop.f32.mrf.mxu1  ;;  %v1773_v44 = vpop.f32.mrf.mxu0 }
 0xa88   : > { %v3048_v41 = vpop.f32.mrf.mxu1  ;;  %v3062_v43 = vpop.f32.mrf.mxu0 }
 0xa89   : > { %v3896_v41 = vadd.f32 %v3663_v58, %v1402_v55  ;;  %v1410_v43 = vadd.f32 %v2694_v2, %v3773_v36  ;;  %v3912_v58 = vadd.f32 %v3670_v60, %v1407_v34  ;;  %v2161_v60 = vld [vmem:[%s4059_s8] sm:$0xff] }
 0xa8a   : > { %v1719_v28 = vpop.f32.mrf.mxu1  ;;  %v1776_v48 = vpop.f32.mrf.mxu0  ;;  %v2166_v53 = vpack.c.bf16 %v2162_v25, %v2161_v60 }
 0xa8b   : > { %v1801_v9 = vpack.c.bf16 %v1719_v28, %v1716_v4  ;;  %v1810_v23 = vpack.c.bf16 %v1776_v48, %v1773_v44  ;;  %v1949_v4 = vpack.c.bf16 %v3883_v6, %v3886_v40  ;;  %v1399_v44 = vadd.f32 %v2694_v2, %v3767_v51 }
 0xa8c   : > { %v3049_v7 = vpop.f32.mrf.mxu1  ;;  %v3063_v35 = vpop.f32.mrf.mxu0  ;;  %v3909_v51 = vadd.f32 %v3672_v61, %v1410_v43  ;;  %v2758_v61 = vld [vmem:[%s4058_s7 + $0xc8] sm:$0xff] }
 0xa8d   : > { %3077 = vmatmul.mubr.msk.bf16.vlgmr.msra.gmra.mxu1 %vm713_vm4, %v1810_v23  ;;  %3093 = vmatmul.mubr.msk.bf16.vlgmr.msra.gmra.mxu0 %vm713_vm4, %v1801_v9  ;;  %v3899_v52 = vadd.f32 %v3660_v57, %v1399_v44  ;;  %v2083_v36 = vpack.c.bf16 %v2758_v61, %v2757_v59 }
 0xa8e   : > { %v1724_v46 = vpop.f32.mrf.mxu1  ;;  %v1781_v62 = vpop.f32.mrf.mxu0  ;;  %3080 = vmatprep.mubr.msk.bf16.mxu1 %vm3320_vm1, %v3319_v1  ;;  %3096 = vmatprep.mubr.msk.bf16.mxu0 %vm3320_vm1, %v3319_v1  ;;  %v1951_v57 = vpack.c.bf16 %v3909_v51, %v3912_v58 }
 0xa8f   : > { %3105 = vmatpush3.bf16.msra.mxu1 %v1952_v54  ;;  %v1950_v49 = vpack.c.bf16 %v3896_v41, %v3899_v52  ;;  %3119 = vmatpush3.bf16.msra.mxu0 %v2083_v36 }
 0xa90   : > { %v3052_v32 = vpop.f32.mrf.mxu1  ;;  %v3066_v50 = vpop.f32.mrf.mxu0  ;;  %3132 = vmatprep.subr.bf16.mxu1 %v3319_v1  ;;  %3146 = vmatprep.subr.bf16.mxu0 %v3319_v1 }
 0xa92   : > { %v1727_v42 = vpop.f32.mrf.mxu1  ;;  %v1784_v63 = vpop.f32.mrf.mxu0 }
 0xa93   : > { %v1802_v47 = vpack.c.bf16 %v1727_v42, %v1724_v46  ;;  %v1811_v39 = vpack.c.bf16 %v1784_v63, %v1781_v62 }
 0xa94   : > { %v3053_v26 = vpop.f32.mrf.mxu1  ;;  %v3067_v45 = vpop.f32.mrf.mxu0 }
 0xa95   : > { %3081 = vmatmul.mubr.msk.bf16.gmra.mxu1 %vm713_vm4, %v1811_v39  ;;  %3097 = vmatmul.mubr.msk.bf16.gmra.mxu0 %vm713_vm4, %v1802_v47 }
 0xa96   : > { %v1732_v33 = vpop.f32.mrf.mxu1  ;;  %v1789_v56 = vpop.f32.mrf.mxu0  ;;  %3084 = vmatprep.mubr.msk.bf16.mxu1 %vm3320_vm1, %v3319_v1  ;;  %3100 = vmatprep.mubr.msk.bf16.mxu0 %vm3320_vm1, %v3319_v1 }
 0xa98   : > { %v3056_v0 = vpop.f32.mrf.mxu1  ;;  %v3070_v38 = vpop.f32.mrf.mxu0 }
 0xa9a   : > { %v1735_v10 = vpop.f32.mrf.mxu1  ;;  %v1792_v14 = vpop.f32.mrf.mxu0 }
 0xa9b   : > { %v1803_v18 = vpack.c.bf16 %v1735_v10, %v1732_v33  ;;  %v1812_v29 = vpack.c.bf16 %v1792_v14, %v1789_v56 }
 0xa9c   : > { %v3071_v31 = vpop.f32.mrf.mxu0  ;;  %v3057_v3 = vpop.f32.mrf.mxu1 }
 0xa9d   : > { %3085 = vmatmul.mubr.msk.bf16.gmra.mxu1 %vm713_vm4, %v1812_v29  ;;  %3101 = vmatmul.mubr.msk.bf16.gmra.mxu0 %vm713_vm4, %v1803_v18  ;;  %v2750_v29 = vld [vmem:[%s4058_s7 + $0xd0] ss:$0 sm:$0xff] }
 0xa9e   : > { %3106 = vmatprep.mubr.msk.bf16.mxu1 %vm3320_vm1, %v3319_v1  ;;  %3120 = vmatprep.mubr.msk.bf16.mxu0 %vm3320_vm1, %v3319_v1 }
 0xaa5   : > { %3107 = vmatmul.mubr.msk.bf16.vlgmr.msra.gmra.mxu1 %vm655_vm5, %v1949_v4 }
 0xaa6   : > { %3110 = vmatprep.mubr.msk.bf16.mxu1 %vm3320_vm1, %v3319_v1  ;;  %3133 = vmatpush3.bf16.msra.mxu1 %v2166_v53 }
 0xaa7   : > { %3160 = vmatprep.subr.bf16.mxu1 %v3319_v1 }
 0xaad   : > { %3111 = vmatmul.mubr.msk.bf16.gmra.mxu1 %vm655_vm5, %v1950_v49 }
 0xaae   : > { %3114 = vmatprep.mubr.msk.bf16.mxu1 %vm3320_vm1, %v3319_v1 }
 0xab5   : > { %3115 = vmatmul.mubr.msk.bf16.gmra.mxu1 %vm655_vm5, %v1951_v57 }
 0xab6   : > { %3134 = vmatprep.mubr.msk.bf16.mxu1 %vm3320_vm1, %v3319_v1 }
 0xb4d   : > { %v1858_v28 = vpop.f32.mrf.mxu1  ;;  %v1924_v48 = vpop.f32.mrf.mxu0 }
 0xb4e   : > { %v1925_v27 = vadd.f32 %v1924_v48, %v1858_v28 }
 0xb4f   : > { %v3078_v9 = vpop.f32.mrf.mxu1  ;;  %v3094_v23 = vpop.f32.mrf.mxu0 }
 0xb51   : > { %v1861_v54 = vpop.f32.mrf.mxu1  ;;  %v1927_v7 = vpop.f32.mrf.mxu0 }
 0xb52   : > { %v1928_v5 = vadd.f32 %v1927_v7, %v1861_v54 }
 0xb53   : > { %v3079_v35 = vpop.f32.mrf.mxu1  ;;  %v3095_v46 = vpop.f32.mrf.mxu0 }
 0xb55   : > { %v1866_v62 = vpop.f32.mrf.mxu1  ;;  %v1932_v32 = vpop.f32.mrf.mxu0 }
 0xb56   : > { %v1933_v34 = vadd.f32 %v1932_v32, %v1866_v62 }
 0xb57   : > { %v3082_v50 = vpop.f32.mrf.mxu1  ;;  %v3098_v42 = vpop.f32.mrf.mxu0 }
 0xb59   : > { %v1869_v63 = vpop.f32.mrf.mxu1  ;;  %v1935_v47 = vpop.f32.mrf.mxu0 }
 0xb5a   : > { %v1936_v25 = vadd.f32 %v1935_v47, %v1869_v63 }
 0xb5b   : > { %v3083_v39 = vpop.f32.mrf.mxu1  ;;  %v3099_v26 = vpop.f32.mrf.mxu0 }
 0xb5d   : > { %v1874_v45 = vpop.f32.mrf.mxu1  ;;  %v1940_v33 = vpop.f32.mrf.mxu0 }
 0xb5e   : > { %v1941_v54 = vadd.f32 %v1940_v33, %v1874_v45 }
 0xb5f   : > { %v3086_v56 = vpop.f32.mrf.mxu1  ;;  %v3102_v0 = vpop.f32.mrf.mxu0 }
 0xb61   : > { %v1877_v38 = vpop.f32.mrf.mxu1  ;;  %v1943_v2 = vpop.f32.mrf.mxu0 }
 0xb62   : > { %v1944_v32 = vadd.f32 %v1943_v2, %v1877_v38 }
 0xb63   : > { %v3087_v10 = vpop.f32.mrf.mxu1  ;;  %v3103_v14 = vpop.f32.mrf.mxu0 }
 0xb65   : > { %v1996_v18 = vpop.f32.mrf.mxu1 }
 0xb66   : > { %v2019_v31 = vadd.f32 %v1996_v18, %v1925_v27 }
 0xb67   : > { %v3108_v3 = vpop.f32.mrf.mxu1 }
 0xb68   : > { %v2030_v4 = vadd.f32 %v2750_v29, %v2019_v31 }
 0xb69   : > { %v1999_v55 = vpop.f32.mrf.mxu1 }
 0xb6a   : > { %v2751_v44 = vmul.f32 -1.442695, %v2030_v4  ;;  %v2020_v49 = vadd.f32 %v1999_v55, %v1928_v5 }
 0xb6b   : > { %v3109_v43 = vpop.f32.mrf.mxu1 }
 0xb6c   : > { %3251 = vpow2.f32 %v2751_v44  ;;  %v2031_v57 = vadd.f32 %v2750_v29, %v2020_v49 }
 0xb6d   : > { %v2004_v59 = vpop.f32.mrf.mxu1 }
 0xb6e   : > { %v2752_v61 = vmul.f32 -1.442695, %v2031_v57  ;;  %v2021_v36 = vadd.f32 %v2004_v59, %v1933_v34 }
 0xb6f   : > { %v3112_v60 = vpop.f32.mrf.mxu1 }
 0xb70   : > { %3253 = vpow2.f32 %v2752_v61  ;;  %v2032_v53 = vadd.f32 %v2750_v29, %v2021_v36 }
 0xb71   : > { %v2007_v28 = vpop.f32.mrf.mxu1 }
 0xb72   : > { %v2753_v48 = vmul.f32 -1.442695, %v2032_v53  ;;  %v2022_v9 = vadd.f32 %v2007_v28, %v1936_v25 }
 0xb73   : > { %v3113_v23 = vpop.f32.mrf.mxu1 }
 0xb74   : > { %3255 = vpow2.f32 %v2753_v48  ;;  %v2033_v7 = vadd.f32 %v2750_v29, %v2022_v9  ;;  %v2778_v23 = vcombine.low %v2324_v19, %v2325_v20 }
 0xb75   : > { %v2012_v35 = vpop.f32.mrf.mxu1 }
 0xb76   : > { %v2754_v46 = vmul.f32 -1.442695, %v2033_v7  ;;  %v2023_v50 = vadd.f32 %v2012_v35, %v1941_v54  ;;  %v2326_v54 = vld [vmem:[%s392_s24] sm:$0xff] }
 0xb77   : > { %v3116_v62 = vpop.f32.mrf.mxu1 }
 0xb78   : > { %3257 = vpow2.f32 %v2754_v46  ;;  %v2034_v42 = vadd.f32 %v2750_v29, %v2023_v50 }
 0xb79   : > { %v3252_v39 = vpop.eup %3251  ;;  %v2015_v26 = vpop.f32.mrf.mxu1 }
 0xb7a   : > { %v2054_v56 = vadd.f32 1.0, %v3252_v39  ;;  %v2755_v63 = vmul.f32 -1.442695, %v2034_v42  ;;  %v2024_v47 = vadd.f32 %v2015_v26, %v1944_v32 }
 0xb7b   : > { %v3117_v0 = vpop.f32.mrf.mxu1 }
 0xb7c   : > { %v2035_v10 = vadd.f32 %v2750_v29, %v2024_v47  ;;  %3259 = vpow2.f32 %v2755_v63 }
 0xb7d   : > { %v3254_v14 = vpop.eup %3253  ;;  %3261 = vrcp.f32 %v2054_v56 }
 0xb7e   : > { %v2055_v45 = vadd.f32 1.0, %v3254_v14  ;;  %v2756_v33 = vmul.f32 -1.442695, %v2035_v10 }
 0xb80   : > { %3263 = vrcp.f32 %v2055_v45 }
 0xb81   : > { %v3256_v27 = vpop.eup %3255  ;;  %3265 = vpow2.f32 %v2756_v33 }
 0xb82   : > { %v2056_v18 = vadd.f32 1.0, %v3256_v27 }
 0xb84   : > { %3267 = vrcp.f32 %v2056_v18 }
 0xb85   : > { %v3258_v31 = vpop.eup %3257 }
 0xb86   : > { %v2057_v38 = vadd.f32 1.0, %v3258_v31 }
 0xb88   : > { %3269 = vrcp.f32 %v2057_v38 }
 0xb89   : > { %v3260_v2 = vpop.eup %3259 }
 0xb8a   : > { %v3262_v3 = vpop.eup %3261  ;;  %v2058_v5 = vadd.f32 1.0, %v3260_v2 }
 0xb8b   : > { %v2072_v49 = vmul.f32 %v3262_v3, %v2030_v4 }
 0xb8c   : > { %3271 = vrcp.f32 %v2058_v5 }
 0xb8d   : > { %v3264_v55 = vpop.eup %3263 }
 0xb8e   : > { %v3266_v44 = vpop.eup %3265  ;;  %v2073_v29 = vmul.f32 %v3264_v55, %v2031_v57 }
 0xb8f   : > { %v2059_v43 = vadd.f32 1.0, %v3266_v44  ;;  %v2764_v44 = vld [vmem:[%s4059_s8 + $0x10] ss:$0 sm:$0xff] }
 0xb90   : > { %v2080_v34 = vpack.c.bf16 %v2073_v29, %v2072_v49 }
 0xb91   : > { %3273 = vrcp.f32 %v2059_v43  ;;  %v3268_v59 = vpop.eup %3267 }
 0xb92   : > { %3121 = vmatmul.mubr.msk.bf16.vlgmr.msra.gmra.mxu0 %vm655_vm5, %v2080_v34  ;;  %v2074_v36 = vmul.f32 %v3268_v59, %v2032_v53  ;;  %v2777_v53 = vcombine.low %v2322_v22, %v2323_v24 }
 0xb93   : > { %3124 = vmatprep.mubr.msk.bf16.mxu0 %vm3320_vm1, %v3319_v1 }
 0xb95   : > { %v3270_v61 = vpop.eup %3269 }
 0xb96   : > { %v2075_v60 = vmul.f32 %v3270_v61, %v2033_v7  ;;  %v2327_v7 = vld [vmem:[%s392_s24 + $0x8] sm:$0xff] }
 0xb97   : > { %v2328_v35 = vpack.c.bf16 %v2327_v7, %v2326_v54 }
 0xb98   : > { %v2081_v25 = vpack.c.bf16 %v2075_v60, %v2074_v36 }
 0xb99   : > { %v3272_v4 = vpop.eup %3271  ;;  %3147 = vmatpush3.bf16.msra.mxu0 %v2328_v35 }
 0xb9a   : > { %3125 = vmatmul.mubr.msk.bf16.gmra.mxu0 %vm655_vm5, %v2081_v25  ;;  %v2076_v28 = vmul.f32 %v3272_v4, %v2034_v42 }
 0xb9b   : > { %3128 = vmatprep.mubr.msk.bf16.mxu0 %vm3320_vm1, %v3319_v1 }
 0xb9e   : > { %v3274_v57 = vpop.eup %3273 }
 0xb9f   : > { %v2077_v48 = vmul.f32 %v3274_v57, %v2035_v10 }
 0xba1   : > { %v2082_v9 = vpack.c.bf16 %v2077_v48, %v2076_v28 }
 0xba3   : > { %3129 = vmatmul.mubr.msk.bf16.gmra.mxu0 %vm655_vm5, %v2082_v9 }
 0xba4   : > { %3148 = vmatprep.mubr.msk.bf16.mxu0 %vm3320_vm1, %v3319_v1 }
 0xbab   : > { %3149 = vmatmul.mubr.msk.bf16.vlgmr.msra.gmra.mxu0 %vm655_vm5, %v3454_v30 }
 0xbac   : > { %3152 = vmatprep.mubr.msk.bf16.mxu0 %vm3320_vm1, %v3319_v1 }
 0xbb3   : > { %3153 = vmatmul.mubr.msk.bf16.gmra.mxu0 %vm655_vm5, %v2777_v53 }
 0xbb4   : > { %3156 = vmatprep.mubr.msk.bf16.mxu0 %vm3320_vm1, %v3319_v1 }
 0xbbb   : > { %3157 = vmatmul.mubr.msk.bf16.gmra.mxu0 %vm655_vm5, %v2778_v23 }
 0xc52   : > { %v2132_v11 = vpop.f32.mrf.mxu0 }
 0xc53   : > { %v2133_v13 = vadd.f32 %v2760_v8, %v2132_v11 }
 0xc54   : > { %v3122_v12 = vpop.f32.mrf.mxu0 }
 0xc55   : > { %v2155_v19 = vadd.f32 %v2133_v13, %v3886_v40 }
 0xc56   : > { %v2135_v15 = vpop.f32.mrf.mxu0 }
 0xc57   : > { %v2136_v16 = vadd.f32 %v2760_v8, %v2135_v15 }
 0xc58   : > { %v3123_v17 = vpop.f32.mrf.mxu0 }
 0xc59   : > { %v2156_v20 = vadd.f32 %v2136_v16, %v3883_v6 }
 0xc5a   : > { %v2140_v21 = vpop.f32.mrf.mxu0 }
 0xc5b   : > { %v2163_v22 = vpack.c.bf16 %v2156_v20, %v2155_v19  ;;  %v2141_v30 = vadd.f32 %v2760_v8, %v2140_v21 }
 0xc5c   : > { %v3126_v24 = vpop.f32.mrf.mxu0 }
 0xc5d   : > { %3135 = vmatmul.mubr.msk.bf16.vlgmr.msra.gmra.mxu1 %vm655_vm5, %v2163_v22  ;;  %v2157_v32 = vadd.f32 %v2141_v30, %v3899_v52 }
 0xc5e   : > { %v2143_v46 = vpop.f32.mrf.mxu0  ;;  %3138 = vmatprep.mubr.msk.bf16.mxu1 %vm3320_vm1, %v3319_v1 }
 0xc5f   : > { %v2144_v50 = vadd.f32 %v2760_v8, %v2143_v46 }
 0xc60   : > { %v3127_v62 = vpop.f32.mrf.mxu0 }
 0xc61   : > { %v2158_v42 = vadd.f32 %v2144_v50, %v3896_v41 }
 0xc63   : > { %v2164_v39 = vpack.c.bf16 %v2158_v42, %v2157_v32  ;;  %v2148_v40 = vpop.f32.mrf.mxu0 }
 0xc64   : > { %v2149_v6 = vadd.f32 %v2760_v8, %v2148_v40  ;;  %v2774_v40 = vld [vmem:[%s4059_s8 + $0x18] ss:$0 sm:$0xff] }
 0xc65   : > { %v3130_v26 = vpop.f32.mrf.mxu0  ;;  %3139 = vmatmul.mubr.msk.bf16.gmra.mxu1 %vm655_vm5, %v2164_v39 }
 0xc66   : > { %3142 = vmatprep.mubr.msk.bf16.mxu1 %vm3320_vm1, %v3319_v1  ;;  %v2159_v0 = vadd.f32 %v2149_v6, %v3912_v58 }
 0xc67   : > { %v2151_v56 = vpop.f32.mrf.mxu0 }
 0xc68   : > { %v2152_v63 = vadd.f32 %v2760_v8, %v2151_v56 }
 0xc69   : > { %v3131_v47 = vpop.f32.mrf.mxu0 }
 0xc6a   : > { %v2160_v10 = vadd.f32 %v2152_v63, %v3909_v51 }
 0xc6b   : > { %v3987_v41 = vpop.f32.mrf.mxu0 }
 0xc6c   : > { %v2165_v14 = vpack.c.bf16 %v2160_v10, %v2159_v0 }
 0xc6d   : > { %v3150_v52 = vpop.f32.mrf.mxu0 }
 0xc6e   : > { %3143 = vmatmul.mubr.msk.bf16.gmra.mxu1 %vm655_vm5, %v2165_v14 }
 0xc6f   : > { %3166 = vmatprep.mubr.msk.bf16.mxu1 %vm3320_vm1, %v3319_v1  ;;  %v3989_v45 = vpop.f32.mrf.mxu0 }
 0xc71   : > { %v3151_v33 = vpop.f32.mrf.mxu0 }
 0xc73   : > { %v3991_v27 = vpop.f32.mrf.mxu0 }
 0xc75   : > { %v3154_v18 = vpop.f32.mrf.mxu0 }
 0xc77   : > { %v3993_v31 = vpop.f32.mrf.mxu0 }
 0xc79   : > { %v3155_v58 = vpop.f32.mrf.mxu0 }
 0xc7b   : > { %v3995_v38 = vpop.f32.mrf.mxu0 }
 0xc7d   : > { %v3158_v51 = vpop.f32.mrf.mxu0 }
 0xc7f   : > { %v3997_v2 = vpop.f32.mrf.mxu0 }
 0xc80   : > { %v2415_v10 = vmul.f32 %v3997_v2, %v3997_v2 }
 0xc81   : > { %v3159_v3 = vpop.f32.mrf.mxu0 }
 0xd1d   : > { %v2215_v5 = vpop.f32.mrf.mxu1 }
 0xd1e   : > { %v2216_v28 = vadd.f32 %v2764_v44, %v2215_v5  ;;  %v2413_v5 = vmul.f32 %v3993_v31, %v3993_v31 }
 0xd1f   : > { %v3136_v55 = vpop.f32.mrf.mxu1 }
 0xd20   : > { %v2768_v54 = vmul.f32 -1.442695, %v2216_v28  ;;  %v2432_v55 = vsel %vm2416_vm6, %v2415_v10, 0.0 }
 0xd21   : > { %v2218_v49 = vpop.f32.mrf.mxu1 }
 0xd22   : > { %v2219_v29 = vadd.f32 %v2764_v44, %v2218_v49 }
 0xd23   : > { %v3137_v43 = vpop.f32.mrf.mxu1 }
 0xd24   : > { %v2769_v34 = vmul.f32 -1.442695, %v2219_v29 }
 0xd25   : > { %v2223_v59 = vpop.f32.mrf.mxu1 }
 0xd26   : > { %3275 = vpow2.f32 %v2769_v34  ;;  %v2224_v36 = vadd.f32 %v2764_v44, %v2223_v59  ;;  %v2411_v34 = vmul.f32 %v3989_v45, %v3989_v45  ;;  %v2426_v59 = vsel %vm2416_vm6, %v2413_v5, 0.0 }
 0xd27   : > { %v3140_v61 = vpop.f32.mrf.mxu1 }
 0xd28   : > { %v2770_v48 = vmul.f32 -1.442695, %v2224_v36 }
 0xd29   : > { %v2226_v60 = vpop.f32.mrf.mxu1 }
 0xd2a   : > { %v2227_v25 = vadd.f32 %v2764_v44, %v2226_v60  ;;  %v2420_v60 = vsel %vm2416_vm6, %v2411_v34, 0.0 }
 0xd2b   : > { %v3141_v4 = vpop.f32.mrf.mxu1 }
 0xd2c   : > { %v2771_v57 = vmul.f32 -1.442695, %v2227_v25 }
 0xd2e   : > { %3277 = vpow2.f32 %v2771_v57  ;;  %v2231_v9 = vpop.f32.mrf.mxu1  ;;  %v2412_v57 = vmul.f32 %v3991_v27, %v3991_v27 }
 0xd2f   : > { %v2232_v53 = vadd.f32 %v2764_v44, %v2231_v9  ;;  %3279 = vpow2.f32 %v2770_v48  ;;  %v2410_v48 = vmul.f32 %v3987_v41, %v3987_v41 }
 0xd30   : > { %v3144_v23 = vpop.f32.mrf.mxu1  ;;  %v2423_v9 = vsel %vm2416_vm6, %v2412_v57, 0.0 }
 0xd31   : > { %v2772_v7 = vmul.f32 -1.442695, %v2232_v53  ;;  %v2775_v23 = vld [vmem:[%s4059_s8 + $0x20] ss:$0 sm:$0xff] }
 0xd32   : > { %v2234_v35 = vpop.f32.mrf.mxu1 }
 0xd33   : > { %3281 = vpow2.f32 %v2772_v7  ;;  %v2235_v8 = vadd.f32 %v2764_v44, %v2234_v35  ;;  %v3276_v12 = vpop.eup %3275 }
 0xd34   : > { %v3145_v11 = vpop.f32.mrf.mxu1  ;;  %3283 = vpow2.f32 %v2768_v54  ;;  %v2257_v15 = vadd.f32 1.0, %v3276_v12 }
 0xd35   : > { %v2773_v13 = vmul.f32 -1.442695, %v2235_v8 }
 0xd37   : > { %3285 = vpow2.f32 %v2773_v13 }
 0xd38   : > { %3287 = vrcp.f32 %v2257_v15 }
 0xd3b   : > { %v3278_v16 = vpop.eup %3277 }
 0xd3c   : > { %v2259_v17 = vadd.f32 1.0, %v3278_v16  ;;  %v3280_v19 = vpop.eup %3279 }
 0xd3d   : > { %v2258_v21 = vadd.f32 1.0, %v3280_v19 }
 0xd3e   : > { %3289 = vrcp.f32 %v2259_v17 }
 0xd40   : > { %v3282_v20 = vpop.eup %3281 }
 0xd41   : > { %v2260_v22 = vadd.f32 1.0, %v3282_v20  ;;  %v3284_v24 = vpop.eup %3283 }
 0xd42   : > { %v2256_v46 = vadd.f32 1.0, %v3284_v24 }
 0xd43   : > { %3291 = vrcp.f32 %v2260_v22 }
 0xd44   : > { %v3286_v30 = vpop.eup %3285  ;;  %3293 = vrcp.f32 %v2258_v21 }
 0xd45   : > { %v2261_v50 = vadd.f32 1.0, %v3286_v30  ;;  %v3288_v62 = vpop.eup %3287 }
 0xd46   : > { %v2275_v42 = vmul.f32 %v3288_v62, %v2219_v29 }
 0xd47   : > { %3295 = vrcp.f32 %v2261_v50 }
 0xd48   : > { %3297 = vrcp.f32 %v2256_v46  ;;  %v2286_v63 = vmul.f32 %v2774_v40, %v2275_v42 }
 0xd4a   : > { %v2294_v33 = vsel %vm655_vm5, %v2286_v63, 0.0 }
 0xd4b   : > { %v3290_v32 = vpop.eup %3289 }
 0xd4c   : > { %v2277_v39 = vmul.f32 %v3290_v32, %v2227_v25  ;;  %v2414_v25 = vmul.f32 %v3995_v38, %v3995_v38 }
 0xd4e   : > { %v2288_v26 = vmul.f32 %v2774_v40, %v2277_v39 }
 0xd50   : > { %v3292_v6 = vpop.eup %3291  ;;  %v2300_v56 = vsel %vm655_vm5, %v2288_v26, 0.0 }
 0xd51   : > { %v2278_v47 = vmul.f32 %v3292_v6, %v2232_v53  ;;  %2301 = vadd.xlane.f32.xlu0 %v2300_v56  ;;  %v3294_v0 = vpop.eup %3293  ;;  %v2417_v53 = vsel %vm2416_vm6, %v2410_v48, 0.0 }
 0xd52   : > { %v2276_v18 = vmul.f32 %v3294_v0, %v2224_v36 }
 0xd53   : > { %v2289_v14 = vmul.f32 %v2774_v40, %v2278_v47 }
 0xd54   : > { %v3296_v52 = vpop.eup %3295  ;;  %v2287_v43 = vmul.f32 %v2774_v40, %v2276_v18 }
 0xd55   : > { %v2279_v58 = vmul.f32 %v3296_v52, %v2235_v8  ;;  %2295 = vadd.xlane.f32.xlu0 %v2294_v33  ;;  %v2303_v51 = vsel %vm655_vm5, %v2289_v14, 0.0  ;;  %v3298_v3 = vpop.eup %3297 }
 0xd56   : > { %2304 = vadd.xlane.f32.xlu1 %v2303_v51  ;;  %v2274_v49 = vmul.f32 %v3298_v3, %v2216_v28  ;;  %v2297_v61 = vsel %vm655_vm5, %v2287_v43, 0.0  ;;  %v2429_v28 = vsel %vm2416_vm6, %v2414_v25, 0.0 }
 0xd57   : > { %v2290_v44 = vmul.f32 %v2774_v40, %v2279_v58 }
 0xd58   : > { %v2285_v36 = vmul.f32 %v2774_v40, %v2274_v49 }
 0xd59   : > { %v2306_v29 = vsel %vm655_vm5, %v2290_v44, 0.0  ;;  %2433 = vadd.xlane.f32.xlu0 %v2432_v55 }
 0xd5a   : > { %2307 = vadd.xlane.f32.xlu1 %v2306_v29  ;;  %v2291_v4 = vsel %vm655_vm5, %v2285_v36, 0.0 }
 0xd5d   : > { %2427 = vadd.xlane.f32.xlu0 %v2426_v59 }
 0xd5e   : > { %2298 = vadd.xlane.f32.xlu1 %v2297_v61 }
 0xd61   : > { %2421 = vadd.xlane.f32.xlu0 %v2420_v60 }
 0xd62   : > { %2292 = vadd.xlane.f32.xlu1 %v2291_v4 }
 0xd66   : > { %2430 = vadd.xlane.f32.xlu1 %v2429_v28 }
 0xd6a   : > { %2424 = vadd.xlane.f32.xlu1 %v2423_v9 }
 0xd6e   : > { %2418 = vadd.xlane.f32.xlu1 %v2417_v53 }
 0xdda   : > { %v2302_v11 = vpop.xlane.xlu0 %2301 }
 0xddb   : > { %v2317_v16 = vadd.f32 %v2775_v23, %v2302_v11 }
 0xdde   : > { %v2296_v19 = vpop.xlane.xlu0 %2295 }
 0xddf   : > { %v2305_v54 = vpop.xlane.xlu1 %2304  ;;  %v2315_v20 = vadd.f32 %v2775_v23, %v2296_v19 }
 0xde0   : > { %v2318_v7 = vadd.f32 %v2775_v23, %v2305_v54 }
 0xde2   : > { %2475 = vperm.xlu1 %3183, %v2318_v7   ;;  %v2434_v21 = vpop.xlane.xlu0 %2433 }
 0xde3   : > { %v2308_v35 = vpop.xlane.xlu1 %2307  ;;  %v2440_v24 = vadd.f32 1e-16, %v2434_v21 }
 0xde4   : > { %v2319_v8 = vadd.f32 %v2775_v23, %v2308_v35 }
 0xde5   : > { %3299 = vrsqrt.f32 %v2440_v24 }
 0xde6   : > { %2480 = vperm.xlu0 %3184, %v2319_v8   ;;  %v2428_v46 = vpop.xlane.xlu0 %2427 }
 0xde7   : > { %v2299_v12 = vpop.xlane.xlu1 %2298  ;;  %v2438_v62 = vadd.f32 1e-16, %v2428_v46 }
 0xde8   : > { %v2316_v13 = vadd.f32 %v2775_v23, %v2299_v12 }
 0xdea   : > { %2465 = vperm.xlu1 %3183, %v2316_v13   ;;  %v2422_v32 = vpop.xlane.xlu0 %2421 }
 0xdeb   : > { %v2293_v15 = vpop.xlane.xlu1 %2292  ;;  %v2436_v40 = vadd.f32 1e-16, %v2422_v32 }
 0xdec   : > { %v2314_v17 = vadd.f32 %v2775_v23, %v2293_v15 }
 0xdee   : > { %2470 = vperm.xlu1 %3183, %v2317_v16   ;;  %2455 = vperm.xlu0 %3184, %v2314_v17  }
 0xdef   : > { %v2431_v22 = vpop.xlane.xlu1 %2430 }
 0xdf0   : > { %v2439_v30 = vadd.f32 1e-16, %v2431_v22 }
 0xdf2   : > { %2460 = vperm.xlu1 %3183, %v2315_v20   ;;  %3301 = vrsqrt.f32 %v2439_v30  ;;  %v3300_v6 = vpop.eup %3299 }
 0xdf3   : > { %v2425_v50 = vpop.xlane.xlu1 %2424  ;;  %3303 = vrsqrt.f32 %v2438_v62  ;;  %v2452_v0 = vmul.f32 %v3300_v6, %v3997_v2 }
 0xdf4   : > { %v2437_v42 = vadd.f32 1e-16, %v2425_v50 }
 0xdf6   : > { %3305 = vrsqrt.f32 %v2437_v42 }
 0xdf7   : > { %v2419_v39 = vpop.xlane.xlu1 %2418  ;;  %3307 = vrsqrt.f32 %v2436_v40 }
 0xdf8   : > { %v2435_v26 = vadd.f32 1e-16, %v2419_v39 }
 0xdfa   : > { %3309 = vrsqrt.f32 %v2435_v26 }
 0xdff   : > { %v3302_v56 = vpop.eup %3301 }
 0xe00   : > { %v2451_v47 = vmul.f32 %v3302_v56, %v3995_v38  ;;  %v3304_v33 = vpop.eup %3303 }
 0xe01   : > { %v2450_v55 = vmul.f32 %v3304_v33, %v3993_v31 }
 0xe03   : > { %v3306_v58 = vpop.eup %3305 }
 0xe04   : > { %v3308_v3 = vpop.eup %3307  ;;  %v2449_v5 = vmul.f32 %v3306_v58, %v3991_v27 }
 0xe05   : > { %v2448_v59 = vmul.f32 %v3308_v3, %v3989_v45 }
 0xe07   : > { %v3310_v44 = vpop.eup %3309 }
 0xe08   : > { %v2447_v34 = vmul.f32 %v3310_v44, %v3987_v41 }
 0xe5d   : > { %v2476_v63 = vpop.permute.xlu1 %2475 }
 0xe5e   : > { %v2487_v14 = vmul.f32 %v2476_v63, %v2451_v47 }
 0xe61   : > { %v2481_v10 = vpop.permute.xlu0 %2480 }
 0xe62   : > { %v2488_v52 = vmul.f32 %v2481_v10, %v2452_v0 }
 0xe64   : > { %v2491_v18 = vpack.c.bf16 %v2488_v52, %v2487_v14 }
 0xe65   : > { %v2466_v51 = vpop.permute.xlu1 %2465 }
 0xe66   : > { %3161 = vmatpush3.bf16.msra.mxu1 %v2491_v18  ;;  %v2485_v49 = vmul.f32 %v2466_v51, %v2449_v5 }
 0xe67   : > { %3162 = vmatprep.subr.bf16.mxu1 %v3319_v1 }
 0xe69   : > { %v2471_v38 = vpop.permute.xlu1 %2470  ;;  %v2456_v29 = vpop.permute.xlu0 %2455 }
 0xe6a   : > { %v2486_v2 = vmul.f32 %v2471_v38, %v2450_v55  ;;  %v2483_v36 = vmul.f32 %v2456_v29, %v2447_v34 }
 0xe6c   : > { %v2490_v43 = vpack.c.bf16 %v2486_v2, %v2485_v49 }
 0xe6d   : > { %v2461_v61 = vpop.permute.xlu1 %2460 }
 0xe6e   : > { %v2484_v60 = vmul.f32 %v2461_v61, %v2448_v59  ;;  %3163 = vmatpush3.bf16.msra.mxu1 %v2490_v43 }
 0xe6f   : > { %3164 = vmatprep.subr.bf16.mxu1 %v3319_v1 }
 0xe70   : > { %v2489_v27 = vpack.c.bf16 %v2484_v60, %v2483_v36 }
 0xe72   : > { %3165 = vmatpush3.bf16.msra.mxu1 %v2489_v27 }
 0xe75   : > { %3167 = vmatmul.mubr.msk.bf16.vlgmr.msra.gmra.mxu1 %vm608_vm3, %v3475_v37 }
 0xf35   : > { %v2526_v31 = vpop.f32.mrf.mxu1 }
 0xf36   : > { %2533 = vst.msk [vmem:[%s412_s17] sm:$0xff] %vm2416_vm6, %v2526_v31 }
 0xf37   : > { %v3168_v41 = vpop.f32.mrf.mxu1 }
 0xf39   : > { %v2529_v45 = vpop.f32.mrf.mxu1 }
 0xf3a   : > { %2534 = vst.msk [vmem:[%s412_s17 + $0x8] sm:$0xff] %vm2416_vm6, %v2529_v45 }
 0xf3b   : > { %v3169_v25 = vpop.f32.mrf.mxu1 }
 0xf3c PF: > { %s19_s30 = sadd.s32 1, %s3317_s30  }
 0xf3d   : > { %p16_p4 = scmp.ge.s32.totalorder %s19_s30, 10  }
 0xf3f   :  { %18 = sbr.rel (!%p16_p4) target bundleno = 1 (0x1), region = 100 }

</bundles_post_ra>
